<compile_context>
chip_gen: v6e
topology: v6e:2x2x1
jax: 0.10.0
libtpu: 0.0.40
codegen_flags: <defaults>
</compile_context>

<pallas_src>
import numpy as np

import jax
import jax.numpy as jnp
from jax.experimental import pallas as pl
from jax.experimental.pallas import tpu as pltpu

NUM_CLASSES = 10
PADDED_CLASSES = 128          # lane-dense output width (multiple of 128)


# ---------------------------------------------------------------------------
# Fused Pallas kernel: the entire Classifier forward as 4 chained MXU matmuls.
# ---------------------------------------------------------------------------
def _fused_classifier_kernel(x_ref, w1_ref, b1_ref, w2_ref, b2_ref,
                             w3_ref, b3_ref, w4_ref, b4_ref, o_ref):
    # conv1 (dense-lowered) + bias + ReLU
    a = jnp.dot(x_ref[...], w1_ref[...], preferred_element_type=jnp.float32)
    a = jnp.maximum(a + b1_ref[...], 0.0)
    # conv2 (dense-lowered) + bias + ReLU.  Columns ordered (c2, h2, w2),
    # i.e. exactly PyTorch's x.view(B, -1) order -> flatten is a no-op.
    a = jnp.dot(a, w2_ref[...], preferred_element_type=jnp.float32)
    a = jnp.maximum(a + b2_ref[...], 0.0)
    # fc1 + bias + ReLU
    a = jnp.dot(a, w3_ref[...], preferred_element_type=jnp.float32)
    a = jnp.maximum(a + b3_ref[...], 0.0)
    # fc2 + bias (output columns zero-padded to 128 -> unmasked lane-dense store)
    o = jnp.dot(a, w4_ref[...], preferred_element_type=jnp.float32)
    o_ref[...] = o + b4_ref[...]


def fused_classifier(x_flat, p, *, block_b=128):
    """x_flat: (B, C*H*W) f32.  p: prepared (kernel-layout) parameters."""
    B, F = x_flat.shape
    bm = B if B <= block_b else block_b          # full batch, or 128-row tiles
    grid = (pl.cdiv(B, bm),)
    n_out = p["w4"].shape[1]                     # padded class width (128)

    def row_spec(cols):                          # tiled over the batch axis
        return pl.BlockSpec((bm, cols), lambda m: (m, 0))

    def full_spec(shape):                        # weights/biases: resident
        return pl.BlockSpec(shape, lambda m: (0, 0))

    return pl.pallas_call(
        _fused_classifier_kernel,
        out_shape=jax.ShapeDtypeStruct((B, n_out), jnp.float32),
        grid=grid,
        in_specs=[
            row_spec(F),
            full_spec(p["w1"].shape), full_spec(p["b1"].shape),
            full_spec(p["w2"].shape), full_spec(p["b2"].shape),
            full_spec(p["w3"].shape), full_spec(p["b3"].shape),
            full_spec(p["w4"].shape), full_spec(p["b4"].shape),
        ],
        out_specs=row_spec(n_out),
        compiler_params=pltpu.CompilerParams(
            dimension_semantics=("parallel",)),
    )(x_flat, p["w1"], p["b1"], p["w2"], p["b2"],
      p["w3"], p["b3"], p["w4"], p["b4"])


def classifier_forward(x_nchw, prepared_params, num_classes=NUM_CLASSES):
    """PyTorch-semantics Classifier forward.  x_nchw: (B, 4, 16, 16) f32."""
    B = x_nchw.shape[0]
    x_flat = x_nchw.reshape(B, -1)               # free view (NCHW flatten)
    logits_padded = fused_classifier(x_flat, prepared_params)
    return logits_padded[:, :num_classes]        # drop zero-padded lanes


# ---------------------------------------------------------------------------
# One-time parameter preparation (hoisted out of the hot path).
# ---------------------------------------------------------------------------
def conv_dense_matrix(w_oihw, h_in, w_in, stride=2, pad=1):
    """Dense (C_in*H*W, C_out*Ho*Wo) matrix equivalent to a PyTorch
    Conv2d(k, stride, pad) applied to an NCHW-flattened feature vector.
    Row order: (c_in, h_in, w_in); column order: (c_out, h_out, w_out)."""
    w_np = np.asarray(w_oihw, dtype=np.float32)
    c_out, c_in, k_h, k_w = w_np.shape
    h_out = (h_in + 2 * pad - k_h) // stride + 1
    w_out = (w_in + 2 * pad - k_w) // stride + 1
    m = np.zeros((c_in * h_in * w_in, c_out * h_out * w_out), dtype=np.float32)
    for co in range(c_out):
        for ci in range(c_in):
            for kh in range(k_h):
                for kw in range(k_w):
                    val = w_np[co, ci, kh, kw]
                    for ho in range(h_out):
                        hi = ho * stride + kh - pad
                        if hi < 0 or hi >= h_in:
                            continue
                        for wo in range(w_out):
                            wi = wo * stride + kw - pad
                            if wi < 0 or wi >= w_in:
                                continue
                            m[ci * h_in * w_in + hi * w_in + wi,
                              co * h_out * w_out + ho * w_out + wo] += val
    return m, h_out, w_out


def prepare_params(raw, h_in=16, w_in=16, padded_classes=PADDED_CLASSES):
    """Convert PyTorch-layout params to kernel-friendly (K, N) layouts."""
    m1, h1, w1 = conv_dense_matrix(raw["conv1_w"], h_in, w_in)   # (1024, 512)
    bb1 = np.repeat(np.asarray(raw["conv1_b"], np.float32), h1 * w1)[None, :]
    m2, h2, w2 = conv_dense_matrix(raw["conv2_w"], h1, w1)       # (512, 64)
    bb2 = np.repeat(np.asarray(raw["conv2_b"], np.float32), h2 * w2)[None, :]

    # fc2: zero-pad output columns to a lane-dense width (exact: extra cols = 0).
    fc2_w = np.asarray(raw["fc2_w"], np.float32).T               # (32, 10)
    fc2_b = np.asarray(raw["fc2_b"], np.float32)[None, :]        # (1, 10)
    k_dim, n_cls = fc2_w.shape
    w4 = np.zeros((k_dim, padded_classes), np.float32)
    w4[:, :n_cls] = fc2_w
    b4 = np.zeros((1, padded_classes), np.float32)
    b4[:, :n_cls] = fc2_b

    prepared = {
        "w1": m1, "b1": bb1,
        "w2": m2, "b2": bb2,
        "w3": np.asarray(raw["fc1_w"], np.float32).T,            # (64, 32)
        "b3": np.asarray(raw["fc1_b"], np.float32)[None, :],
        "w4": w4, "b4": b4,
    }
    return {k: jnp.asarray(v) for k, v in prepared.items()}


def init_raw_params(key):
    """PyTorch-layout parameters (OIHW conv weights, (out, in) linears)."""
    ks = jax.random.split(key, 8)
    s = 0.1
    return {
        "conv1_w": s * jax.random.normal(ks[0], (8, 4, 3, 3), jnp.float32),
        "conv1_b": s * jax.random.normal(ks[1], (8,), jnp.float32),
        "conv2_w": s * jax.random.normal(ks[2], (4, 8, 3, 3), jnp.float32),
        "conv2_b": s * jax.random.normal(ks[3], (4,), jnp.float32),
        "fc1_w":   s * jax.random.normal(ks[4], (32, 64), jnp.float32),
        "fc1_b":   s * jax.random.normal(ks[5], (32,), jnp.float32),
        "fc2_w":   s * jax.random.normal(ks[6], (10, 32), jnp.float32),
        "fc2_b":   s * jax.random.normal(ks[7], (10,), jnp.float32),
    }


# ---------------------------------------------------------------------------
# Plain-JAX reference (test-only), PyTorch semantics.
# ---------------------------------------------------------------------------
def reference_forward(x, raw):
    def conv(h, w, b):
        y = jax.lax.conv_general_dilated(
            h, w, window_strides=(2, 2), padding=((1, 1), (1, 1)),
            dimension_numbers=("NCHW", "OIHW", "NCHW"),
            precision=jax.lax.Precision.HIGHEST)
        return jax.nn.relu(y + b[None, :, None, None])

    h = conv(x, raw["conv1_w"], raw["conv1_b"])          # (B, 8, 8, 8)
    h = conv(h, raw["conv2_w"], raw["conv2_b"])          # (B, 4, 4, 4)
    flat = h.reshape(h.shape[0], -1)                     # (B, 64), (C,H,W) order
    hp = jax.lax.Precision.HIGHEST
    h = jax.nn.relu(jnp.dot(flat, raw["fc1_w"].T, precision=hp) + raw["fc1_b"])
    return jnp.dot(h, raw["fc2_w"].T, precision=hp) + raw["fc2_b"]


if __name__ == "__main__":
    key = jax.random.PRNGKey(0)
    k_x, k_p = jax.random.split(key)
    x = jax.random.normal(k_x, (2, 4, 16, 16), jnp.float32)   # NCHW input
    raw_params = init_raw_params(k_p)
    params = prepare_params(raw_params)                       # one-time prep

    fwd = jax.jit(classifier_forward)
    logits = jax.block_until_ready(fwd(x, params))
    assert logits.shape == (2, NUM_CLASSES), logits.shape

    ref = jax.block_until_ready(reference_forward(x, raw_params))
    err = float(jnp.max(jnp.abs(logits - ref)))
    assert err < 5e-2, f"mismatch vs reference: max abs err = {err}"

    print("KERNEL_OK")
</pallas_src>

<mosaic_0001>
module attributes {stable_mosaic.version = 11 : i64} {
  func.func @_fused_classifier_kernel(%arg0: i32, %arg1: memref<2x1024xf32, #tpu.memory_space<vmem>>, %arg2: memref<1024x512xf32, #tpu.memory_space<vmem>>, %arg3: memref<1x512xf32, #tpu.memory_space<vmem>>, %arg4: memref<512x64xf32, #tpu.memory_space<vmem>>, %arg5: memref<1x64xf32, #tpu.memory_space<vmem>>, %arg6: memref<64x32xf32, #tpu.memory_space<vmem>>, %arg7: memref<1x32xf32, #tpu.memory_space<vmem>>, %arg8: memref<32x128xf32, #tpu.memory_space<vmem>>, %arg9: memref<1x128xf32, #tpu.memory_space<vmem>>, %arg10: memref<2x128xf32, #tpu.memory_space<vmem>>) attributes {dimension_semantics = [#tpu.dimension_semantics<parallel>], iteration_bounds = array<i64: 1>, scalar_prefetch = 0 : i64, scratch_operands = 0 : i64, tpu.core_type = #tpu.core_type<tc>, window_params = [{transform_indices = @transform_0, window_bounds = array<i64: 2, 1024>}, {pipeline_mode = #tpu.pipeline_mode<synchronous>, transform_indices = @transform_1, window_bounds = array<i64: 1024, 512>}, {pipeline_mode = #tpu.pipeline_mode<synchronous>, transform_indices = @transform_2, window_bounds = array<i64: 1, 512>}, {pipeline_mode = #tpu.pipeline_mode<synchronous>, transform_indices = @transform_3, window_bounds = array<i64: 512, 64>}, {pipeline_mode = #tpu.pipeline_mode<synchronous>, transform_indices = @transform_4, window_bounds = array<i64: 1, 64>}, {pipeline_mode = #tpu.pipeline_mode<synchronous>, transform_indices = @transform_5, window_bounds = array<i64: 64, 32>}, {pipeline_mode = #tpu.pipeline_mode<synchronous>, transform_indices = @transform_6, window_bounds = array<i64: 1, 32>}, {pipeline_mode = #tpu.pipeline_mode<synchronous>, transform_indices = @transform_7, window_bounds = array<i64: 32, 128>}, {pipeline_mode = #tpu.pipeline_mode<synchronous>, transform_indices = @transform_8, window_bounds = array<i64: 1, 128>}, {transform_indices = @transform_9, window_bounds = array<i64: 2, 128>}]} {
    %c0 = arith.constant 0 : index
    %c0_0 = arith.constant 0 : index
    %0 = vector.load %arg1[%c0, %c0_0] : memref<2x1024xf32, #tpu.memory_space<vmem>>, vector<2x1024xf32>
    %c0_1 = arith.constant 0 : index
    %c0_2 = arith.constant 0 : index
    %1 = vector.load %arg2[%c0_1, %c0_2] : memref<1024x512xf32, #tpu.memory_space<vmem>>, vector<1024x512xf32>
    %cst = arith.constant dense<0.000000e+00> : vector<2x512xf32>
    %2 = tpu.matmul %0, %1, %cst {dimension_numbers = #tpu.dot_dimension_numbers<[1], [0], [0], [1], [0, 0, 1, 1], [], []>} : vector<2x1024xf32>, vector<1024x512xf32>, vector<2x512xf32> -> vector<2x512xf32>
    %c0_3 = arith.constant 0 : index
    %c0_4 = arith.constant 0 : index
    %3 = vector.load %arg3[%c0_3, %c0_4] : memref<1x512xf32, #tpu.memory_space<vmem>>, vector<1x512xf32>
    %4 = vector.broadcast %3 : vector<1x512xf32> to vector<2x512xf32>
    %5 = arith.addf %2, %4 : vector<2x512xf32>
    %cst_5 = arith.constant 0.000000e+00 : f32
    %6 = vector.broadcast %cst_5 : f32 to vector<2x512xf32>
    %7 = arith.maximumf %5, %6 : vector<2x512xf32>
    %c0_6 = arith.constant 0 : index
    %c0_7 = arith.constant 0 : index
    %8 = vector.load %arg4[%c0_6, %c0_7] : memref<512x64xf32, #tpu.memory_space<vmem>>, vector<512x64xf32>
    %cst_8 = arith.constant dense<0.000000e+00> : vector<2x64xf32>
    %9 = tpu.matmul %7, %8, %cst_8 {dimension_numbers = #tpu.dot_dimension_numbers<[1], [0], [0], [1], [0, 0, 1, 1], [], []>} : vector<2x512xf32>, vector<512x64xf32>, vector<2x64xf32> -> vector<2x64xf32>
    %c0_9 = arith.constant 0 : index
    %c0_10 = arith.constant 0 : index
    %10 = vector.load %arg5[%c0_9, %c0_10] : memref<1x64xf32, #tpu.memory_space<vmem>>, vector<1x64xf32>
    %11 = vector.broadcast %10 : vector<1x64xf32> to vector<2x64xf32>
    %12 = arith.addf %9, %11 : vector<2x64xf32>
    %cst_11 = arith.constant 0.000000e+00 : f32
    %13 = vector.broadcast %cst_11 : f32 to vector<2x64xf32>
    %14 = arith.maximumf %12, %13 : vector<2x64xf32>
    %c0_12 = arith.constant 0 : index
    %c0_13 = arith.constant 0 : index
    %15 = vector.load %arg6[%c0_12, %c0_13] : memref<64x32xf32, #tpu.memory_space<vmem>>, vector<64x32xf32>
    %cst_14 = arith.constant dense<0.000000e+00> : vector<2x32xf32>
    %16 = tpu.matmul %14, %15, %cst_14 {dimension_numbers = #tpu.dot_dimension_numbers<[1], [0], [0], [1], [0, 0, 1, 1], [], []>} : vector<2x64xf32>, vector<64x32xf32>, vector<2x32xf32> -> vector<2x32xf32>
    %c0_15 = arith.constant 0 : index
    %c0_16 = arith.constant 0 : index
    %17 = vector.load %arg7[%c0_15, %c0_16] : memref<1x32xf32, #tpu.memory_space<vmem>>, vector<1x32xf32>
    %18 = vector.broadcast %17 : vector<1x32xf32> to vector<2x32xf32>
    %19 = arith.addf %16, %18 : vector<2x32xf32>
    %cst_17 = arith.constant 0.000000e+00 : f32
    %20 = vector.broadcast %cst_17 : f32 to vector<2x32xf32>
    %21 = arith.maximumf %19, %20 : vector<2x32xf32>
    %c0_18 = arith.constant 0 : index
    %c0_19 = arith.constant 0 : index
    %22 = vector.load %arg8[%c0_18, %c0_19] : memref<32x128xf32, #tpu.memory_space<vmem>>, vector<32x128xf32>
    %cst_20 = arith.constant dense<0.000000e+00> : vector<2x128xf32>
    %23 = tpu.matmul %21, %22, %cst_20 {dimension_numbers = #tpu.dot_dimension_numbers<[1], [0], [0], [1], [0, 0, 1, 1], [], []>} : vector<2x32xf32>, vector<32x128xf32>, vector<2x128xf32> -> vector<2x128xf32>
    %c0_21 = arith.constant 0 : index
    %c0_22 = arith.constant 0 : index
    %24 = vector.load %arg9[%c0_21, %c0_22] : memref<1x128xf32, #tpu.memory_space<vmem>>, vector<1x128xf32>
    %25 = vector.broadcast %24 : vector<1x128xf32> to vector<2x128xf32>
    %26 = arith.addf %23, %25 : vector<2x128xf32>
    %c0_23 = arith.constant 0 : index
    %c0_24 = arith.constant 0 : index
    %27 = vector.load %arg10[%c0_23, %c0_24] : memref<2x128xf32, #tpu.memory_space<vmem>>, vector<2x128xf32>
    tpu.vector_store %arg10[%c0_23, %c0_24], %26 {strides = array<i32>} : memref<2x128xf32, #tpu.memory_space<vmem>>, vector<2x128xf32>,
    return
  }
  func.func @transform_0(%arg0: i32) -> (i32, i32) {
    %c0_i32 = arith.constant 0 : i32
    %c0_i32_0 = arith.constant 0 : i32
    return %arg0, %c0_i32 : i32, i32
  }
  func.func @transform_1(%arg0: i32) -> (i32, i32) {
    %c0_i32 = arith.constant 0 : i32
    %c0_i32_0 = arith.constant 0 : i32
    %c0_i32_1 = arith.constant 0 : i32
    return %c0_i32, %c0_i32_0 : i32, i32
  }
  func.func @transform_2(%arg0: i32) -> (i32, i32) {
    %c0_i32 = arith.constant 0 : i32
    %c0_i32_0 = arith.constant 0 : i32
    %c0_i32_1 = arith.constant 0 : i32
    return %c0_i32, %c0_i32_0 : i32, i32
  }
  func.func @transform_3(%arg0: i32) -> (i32, i32) {
    %c0_i32 = arith.constant 0 : i32
    %c0_i32_0 = arith.constant 0 : i32
    %c0_i32_1 = arith.constant 0 : i32
    return %c0_i32, %c0_i32_0 : i32, i32
  }
  func.func @transform_4(%arg0: i32) -> (i32, i32) {
    %c0_i32 = arith.constant 0 : i32
    %c0_i32_0 = arith.constant 0 : i32
    %c0_i32_1 = arith.constant 0 : i32
    return %c0_i32, %c0_i32_0 : i32, i32
  }
  func.func @transform_5(%arg0: i32) -> (i32, i32) {
    %c0_i32 = arith.constant 0 : i32
    %c0_i32_0 = arith.constant 0 : i32
    %c0_i32_1 = arith.constant 0 : i32
    return %c0_i32, %c0_i32_0 : i32, i32
  }
  func.func @transform_6(%arg0: i32) -> (i32, i32) {
    %c0_i32 = arith.constant 0 : i32
    %c0_i32_0 = arith.constant 0 : i32
    %c0_i32_1 = arith.constant 0 : i32
    return %c0_i32, %c0_i32_0 : i32, i32
  }
  func.func @transform_7(%arg0: i32) -> (i32, i32) {
    %c0_i32 = arith.constant 0 : i32
    %c0_i32_0 = arith.constant 0 : i32
    %c0_i32_1 = arith.constant 0 : i32
    return %c0_i32, %c0_i32_0 : i32, i32
  }
  func.func @transform_8(%arg0: i32) -> (i32, i32) {
    %c0_i32 = arith.constant 0 : i32
    %c0_i32_0 = arith.constant 0 : i32
    %c0_i32_1 = arith.constant 0 : i32
    return %c0_i32, %c0_i32_0 : i32, i32
  }
  func.func @transform_9(%arg0: i32) -> (i32, i32) {
    %c0_i32 = arith.constant 0 : i32
    %c0_i32_0 = arith.constant 0 : i32
    return %arg0, %c0_i32 : i32, i32
  }
}

</mosaic_0001>

<bundles_post_ra>
// kernel: classifier_forward.1
= control target key start
LH: loop header
LB: loop body
LE: loop exit
PB: predicated region body
PF: predicated region fallthrough
CT: control target
= control target key end

     0   :  { %14 = vsyncpa [#allocation3], 0  ;;  %s2324_s0 = inlined_call_operand.vmem [shape: f32[2,1024], index: 0, kind: input, shape index: {}]   ;;  %s2325_s1 = inlined_call_operand.hbm [shape: f32[1024,512], index: 1, kind: input, shape index: {}]   ;;  %s2326_s2 = inlined_call_operand.hbm [shape: f32[1,512], index: 2, kind: input, shape index: {}]   ;;  %s2327_s3 = inlined_call_operand.vmem [shape: f32[512,64], index: 3, kind: input, shape index: {}]   ;;  %s2328_s4 = inlined_call_operand.hbm [shape: f32[1,64], index: 4, kind: input, shape index: {}]   ;;  %s2329_s5 = inlined_call_operand.vmem [shape: f32[64,32], index: 5, kind: input, shape index: {}]   ;;  %s2330_s6 = inlined_call_operand.hbm [shape: f32[1,32], index: 6, kind: input, shape index: {}]   ;;  %s2331_s7 = inlined_call_operand.hbm [shape: f32[32,128], index: 7, kind: input, shape index: {}]   ;;  %s2332_s8 = inlined_call_operand.hbm [shape: f32[1,128], index: 8, kind: input, shape index: {}]   ;;  %s2333_s9 = inlined_call_operand.hbm [shape: f32[2,128], index: 9, kind: output, shape index: {}]  }
   0x1   :  { %15 = vsyncpa [#allocation6], 0 }
   0x2   :  { %16 = vsyncpa [#allocation9], 0 }
   0x3   :  { %17 = vsyncpa [#allocation12], 0 }
   0x4   :  { %18 = vsyncpa [#allocation4], 0  ;;  %s1950_s30 = smov [#allocation5]   ;;  %s1951_s11 = smov [#allocation8]  }
   0x5   :  { %s39_s10 = sshll.u32 %s1950_s30, 4  ;;  %s63_s12 = sshll.u32 %s1951_s11, 4  ;;  %s40_s10 = int_to_ptr.vmem [resolvable:$true] %s39_s10  ;;  %s64_s12 = int_to_ptr.vmem [resolvable:$true] %s63_s12 }
   0x6   :  { %s1808_s13 = scalar_lea.vmem %s40_s10, 64  ;;  %p1813_p1 = scmp.lt.s32.totalorder %s40_s10, %s40_s10 }
   0x7   :  { %p1809_p0 = scmp.ne.s32.totalorder %s40_s10, %s1808_s13  ;;  %p1814_p2 = scmp.lt.s32.totalorder %s1808_s13, %s1808_s13 }
   0x9   :  { %p1815_p3 = por %p1814_p2, %p1813_p1 }
   0xb   :  { %p1816_p4 = pnand %p1815_p3, %p1809_p0 }
   0xd   :  { %1819 = shalt.err (!%p1816_p4)
}
   0xe   :  { %42 = dma.hbm_to_vmem [thread:$0]  %s2326_s2, 64, %s40_s10, [#allocation6]  }
   0xf   :  { %s1828_s16 = scalar_lea.vmem %s64_s12, 16  ;;  %s1832_s17 = scalar_lea.vmem %s64_s12, 32 }
  0x10   :  { %p1829_p5 = scmp.ne.s32.totalorder %s64_s12, %s1828_s16  ;;  %p1833_p6 = scmp.lt.s32.totalorder %s64_s12, %s64_s12 }
  0x11   :  { %p1834_p7 = scmp.lt.s32.totalorder %s1832_s17, %s1828_s16 }
  0x13   :  { %p1835_p8 = por %p1834_p7, %p1833_p6 }
  0x15   :  { %p1836_p9 = pnand %p1835_p8, %p1829_p5 }
  0x17   :  { %1839 = shalt.err (!%p1836_p9)
}
  0x18   :  { %66 = dma.hbm_to_vmem [thread:$0]  %s2330_s6, 16, %s64_s12, [#allocation9]  }
  0x19   :  { %s1952_s20 = smov [#allocation2]  }
  0x1a   :  { %s26_s21 = sshll.u32 %s1952_s20, 4  ;;  %s27_s21 = int_to_ptr.vmem [resolvable:$true] %s26_s21 }
  0x1b   :  { %s1848_s22 = scalar_lea.vmem %s27_s21, 65536  ;;  %p1853_p11 = scmp.lt.s32.totalorder %s27_s21, %s27_s21 }
  0x1c   :  { %p1849_p10 = scmp.ne.s32.totalorder %s27_s21, %s1848_s22  ;;  %p1854_p12 = scmp.lt.s32.totalorder %s1848_s22, %s1848_s22 }
  0x1e   :  { %p1855_p13 = por %p1854_p12, %p1853_p11 }
  0x20   :  { %p1856_p0 = pnand %p1855_p13, %p1849_p10 }
  0x22   :  { %1859 = shalt.err (!%p1856_p0)
}
  0x23   :  { %s1953_s2 = smov 512   ;;  %s1954_s23 = smov 32  }
  0x24   :  { %32 = dma.hbm_to_vmem [thread:$0]  %s2325_s1, 65536, %s27_s21, [#allocation3], %s1953_s2, %s1953_s2, %s1954_s23  }
  0x25   :  { %s1955_s26 = smov [#allocation7]   ;;  %s1956_s6 = smov [#allocation10]  }
  0x26   :  { %s51_s27 = sshll.u32 %s1955_s26, 4  ;;  %s72_s28 = sshll.u32 %s1956_s6, 4  ;;  %s52_s27 = int_to_ptr.vmem [resolvable:$true] %s51_s27  ;;  %s73_s28 = int_to_ptr.vmem [resolvable:$true] %s72_s28 }
  0x27   :  { %s1868_s29 = scalar_lea.vmem %s52_s27, 16  ;;  %s1872_s30 = scalar_lea.vmem %s52_s27, 32 }
  0x28   :  { %p1869_p1 = scmp.ne.s32.totalorder %s52_s27, %s1868_s29  ;;  %p1873_p2 = scmp.lt.s32.totalorder %s52_s27, %s52_s27 }
  0x29   :  { %p1874_p3 = scmp.lt.s32.totalorder %s1872_s30, %s1868_s29 }
  0x2b   :  { %p1875_p4 = por %p1874_p3, %p1873_p2 }
  0x2d   :  { %p1876_p5 = pnand %p1875_p4, %p1869_p1 }
  0x2f   :  { %1879 = shalt.err (!%p1876_p5)
}
  0x30   :  { %54 = dma.hbm_to_vmem [thread:$0]  %s2328_s4, 16, %s52_s27, [#allocation6]  }
  0x31   :  { %s1888_s12 = scalar_lea.vmem %s73_s28, 512  ;;  %p1893_p7 = scmp.lt.s32.totalorder %s73_s28, %s73_s28 }
  0x32   :  { %p1889_p6 = scmp.ne.s32.totalorder %s73_s28, %s1888_s12  ;;  %p1894_p8 = scmp.lt.s32.totalorder %s1888_s12, %s1888_s12 }
  0x34   :  { %p1895_p9 = por %p1894_p8, %p1893_p7 }
  0x36   :  { %p1896_p10 = pnand %p1895_p9, %p1889_p6 }
  0x38   :  { %1899 = shalt.err (!%p1896_p10)
}
  0x39   :  { %s1957_s1 = smov 128   ;;  %s1958_s13 = smov 8  }
  0x3a   :  { %78 = dma.hbm_to_vmem [thread:$0]  %s2331_s7, 512, %s73_s28, [#allocation9], %s1957_s1, %s1957_s1, %s1958_s13  }
  0x3b   :  { %s1959_s16 = smov [#allocation11]  }
  0x3c   :  { %s85_s17 = sshll.u32 %s1959_s16, 4  ;;  %s86_s17 = int_to_ptr.vmem [resolvable:$true] %s85_s17 }
  0x3d   :  { %s1908_s18 = scalar_lea.vmem %s86_s17, 16  ;;  %s1912_s4 = scalar_lea.vmem %s86_s17, 32 }
  0x3e   :  { %p1909_p11 = scmp.ne.s32.totalorder %s86_s17, %s1908_s18  ;;  %p1913_p12 = scmp.lt.s32.totalorder %s86_s17, %s86_s17 }
  0x3f   :  { %p1914_p13 = scmp.lt.s32.totalorder %s1912_s4, %s1908_s18 }
  0x41   :  { %p1915_p0 = por %p1914_p13, %p1913_p12 }
  0x43   :  { %p1916_p1 = pnand %p1915_p0, %p1909_p11 }
  0x45   :  { %1919 = shalt.err (!%p1916_p1)
}
  0x46   :  { %88 = dma.hbm_to_vmem [thread:$0]  %s2332_s8, 16, %s86_s17, [#allocation12]  }
  0x47   :  { %1940 = dma.done.wait [#allocation3], 65536  }
  0x48   :  { %1941 = vsyncadd [#allocation3], 4294901760 }
  0x49   :  { %1942 = dma.done.wait [#allocation6], 80  }
  0x4a   :  { %1943 = vsyncadd [#allocation6], 4294967216 }
  0x4b   :  { %1944 = dma.done.wait [#allocation9], 528  }
  0x4c   :  { %1945 = vsyncadd [#allocation9], 4294966768 }
  0x4d   :  { %1946 = dma.done.wait [#allocation12], 16  }
  0x4e   :  { %1947 = vsyncadd [#allocation12], 4294967280  ;;  %v170_v0 = vld [vmem:[#allocation2 + $0x1e8] sm:$0xff]  ;;  %v169_v2 = vld [vmem:[#allocation2 + $0x1e0] sm:$0xff]  ;;  %vm1962_vm0 = vmmov 0   ;;  %vm1486_vm1 = vcmask 523264  }
  0x4f   :  { %v298_v1 = vld [vmem:[#allocation2 + $0x5e8] sm:$0xff]  ;;  %687 = vmatprep.subr.mxu0 %v170_v0  ;;  %v297_v3 = vld [vmem:[#allocation2 + $0x5e0] sm:$0xff]  ;;  %vm1572_vm2 = vcmask 261120  }
  0x50   :  { %758 = vmatprep.subr.mxu1 %v298_v1  ;;  %v166_v4 = vld [vmem:[#allocation2 + $0x1c8] sm:$0xff]  ;;  %688 = vmatpush1.msra.mxu0 %v169_v2  ;;  %v165_v6 = vld [vmem:[#allocation2 + $0x1c0] sm:$0xff] }
  0x51   :  { %v294_v5 = vld [vmem:[#allocation2 + $0x5c8] sm:$0xff]  ;;  %759 = vmatpush1.msra.mxu1 %v297_v3  ;;  %v293_v7 = vld [vmem:[#allocation2 + $0x5c0] sm:$0xff]  ;;  %689 = vmatprep.subr.mxu0 %v166_v4 }
  0x52   :  { %v162_v8 = vld [vmem:[#allocation2 + $0x1a8] sm:$0xff]  ;;  %760 = vmatprep.subr.mxu1 %v294_v5  ;;  %v161_v10 = vld [vmem:[#allocation2 + $0x1a0] sm:$0xff]  ;;  %690 = vmatpush1.msra.mxu0 %v165_v6 }
  0x53   :  { %v290_v9 = vld [vmem:[#allocation2 + $0x5a8] sm:$0xff]  ;;  %v289_v11 = vld [vmem:[#allocation2 + $0x5a0] sm:$0xff]  ;;  %761 = vmatpush1.msra.mxu1 %v293_v7  ;;  %691 = vmatprep.subr.mxu0 %v162_v8 }
  0x54   :  { %v158_v12 = vld [vmem:[#allocation2 + $0x188] sm:$0xff]  ;;  %762 = vmatprep.subr.mxu1 %v290_v9  ;;  %v157_v14 = vld [vmem:[#allocation2 + $0x180] sm:$0xff]  ;;  %692 = vmatpush1.msra.mxu0 %v161_v10 }
  0x55   :  { %v286_v13 = vld [vmem:[#allocation2 + $0x588] sm:$0xff]  ;;  %v285_v15 = vld [vmem:[#allocation2 + $0x580] sm:$0xff]  ;;  %763 = vmatpush1.msra.mxu1 %v289_v11  ;;  %693 = vmatprep.subr.mxu0 %v158_v12 }
  0x56   :  { %v154_v16 = vld [vmem:[#allocation2 + $0x168] sm:$0xff]  ;;  %764 = vmatprep.subr.mxu1 %v286_v13  ;;  %v153_v18 = vld [vmem:[#allocation2 + $0x160] sm:$0xff]  ;;  %694 = vmatpush1.msra.mxu0 %v157_v14 }
  0x57   :  { %v282_v17 = vld [vmem:[#allocation2 + $0x568] sm:$0xff]  ;;  %v281_v19 = vld [vmem:[#allocation2 + $0x560] sm:$0xff]  ;;  %765 = vmatpush1.msra.mxu1 %v285_v15  ;;  %695 = vmatprep.subr.mxu0 %v154_v16 }
  0x58   :  { %v150_v20 = vld [vmem:[#allocation2 + $0x148] sm:$0xff]  ;;  %766 = vmatprep.subr.mxu1 %v282_v17  ;;  %v149_v22 = vld [vmem:[#allocation2 + $0x140] sm:$0xff]  ;;  %696 = vmatpush1.msra.mxu0 %v153_v18 }
  0x59   :  { %v278_v21 = vld [vmem:[#allocation2 + $0x548] sm:$0xff]  ;;  %v277_v23 = vld [vmem:[#allocation2 + $0x540] sm:$0xff]  ;;  %767 = vmatpush1.msra.mxu1 %v281_v19  ;;  %697 = vmatprep.subr.mxu0 %v150_v20 }
  0x5a   :  { %v146_v24 = vld [vmem:[#allocation2 + $0x128] sm:$0xff]  ;;  %768 = vmatprep.subr.mxu1 %v278_v21  ;;  %v145_v26 = vld [vmem:[#allocation2 + $0x120] sm:$0xff]  ;;  %698 = vmatpush1.msra.mxu0 %v149_v22 }
  0x5b   :  { %v274_v25 = vld [vmem:[#allocation2 + $0x528] sm:$0xff]  ;;  %v273_v27 = vld [vmem:[#allocation2 + $0x520] sm:$0xff]  ;;  %769 = vmatpush1.msra.mxu1 %v277_v23  ;;  %699 = vmatprep.subr.mxu0 %v146_v24 }
  0x5c   :  { %v142_v28 = vld [vmem:[#allocation2 + $0x108] sm:$0xff]  ;;  %770 = vmatprep.subr.mxu1 %v274_v25  ;;  %v141_v30 = vld [vmem:[#allocation2 + $0x100] sm:$0xff]  ;;  %700 = vmatpush1.msra.mxu0 %v145_v26 }
  0x5d   :  { %v270_v29 = vld [vmem:[#allocation2 + $0x508] sm:$0xff]  ;;  %v269_v31 = vld [vmem:[#allocation2 + $0x500] sm:$0xff]  ;;  %771 = vmatpush1.msra.mxu1 %v273_v27  ;;  %701 = vmatprep.subr.mxu0 %v142_v28 }
  0x5e   :  { %v138_v32 = vld [vmem:[#allocation2 + $0xe8] sm:$0xff]  ;;  %772 = vmatprep.subr.mxu1 %v270_v29  ;;  %v137_v34 = vld [vmem:[#allocation2 + $0xe0] sm:$0xff]  ;;  %702 = vmatpush1.msra.mxu0 %v141_v30  ;;  %v623_v30 = vlaneseq }
  0x5f   :  { %v266_v33 = vld [vmem:[#allocation2 + $0x4e8] sm:$0xff]  ;;  %v265_v35 = vld [vmem:[#allocation2 + $0x4e0] sm:$0xff]  ;;  %773 = vmatpush1.msra.mxu1 %v269_v31  ;;  %703 = vmatprep.subr.mxu0 %v138_v32  ;;  %v1960_v31 = vmov 1983009808  }
  0x60   :  { %v134_v36 = vld [vmem:[#allocation2 + $0xc8] sm:$0xff]  ;;  %774 = vmatprep.subr.mxu1 %v266_v33  ;;  %v133_v38 = vld [vmem:[#allocation2 + $0xc0] sm:$0xff]  ;;  %704 = vmatpush1.msra.mxu0 %v137_v34  ;;  %v647_v32 = vunpack.c.l.s4 %v1960_v31 }
  0x61   :  { %v262_v37 = vld [vmem:[#allocation2 + $0x4c8] sm:$0xff]  ;;  %v261_v39 = vld [vmem:[#allocation2 + $0x4c0] sm:$0xff]  ;;  %775 = vmatpush1.msra.mxu1 %v265_v35  ;;  %705 = vmatprep.subr.mxu0 %v134_v36 }
  0x62   :  { %v130_v40 = vld [vmem:[#allocation2 + $0xa8] sm:$0xff]  ;;  %776 = vmatprep.subr.mxu1 %v262_v37  ;;  %v129_v42 = vld [vmem:[#allocation2 + $0xa0] sm:$0xff]  ;;  %706 = vmatpush1.msra.mxu0 %v133_v38 }
  0x63   :  { %v258_v41 = vld [vmem:[#allocation2 + $0x4a8] sm:$0xff]  ;;  %v257_v43 = vld [vmem:[#allocation2 + $0x4a0] sm:$0xff]  ;;  %777 = vmatpush1.msra.mxu1 %v261_v39  ;;  %707 = vmatprep.subr.mxu0 %v130_v40 }
  0x64   :  { %v126_v44 = vld [vmem:[#allocation2 + $0x88] sm:$0xff]  ;;  %778 = vmatprep.subr.mxu1 %v258_v41  ;;  %v125_v46 = vld [vmem:[#allocation2 + $0x80] sm:$0xff]  ;;  %708 = vmatpush1.msra.mxu0 %v129_v42  ;;  %v2032_v41 = vshrl.u32 %v623_v30, 7  ;;  %v648_v42 = vunpack.c.0.s8 %v647_v32 }
  0x65   :  { %v254_v45 = vld [vmem:[#allocation2 + $0x488] sm:$0xff]  ;;  %v253_v47 = vld [vmem:[#allocation2 + $0x480] sm:$0xff]  ;;  %779 = vmatpush1.msra.mxu1 %v257_v43  ;;  %709 = vmatprep.subr.mxu0 %v126_v44 }
  0x66   :  { %v122_v48 = vld [vmem:[#allocation2 + $0x68] sm:$0xff]  ;;  %780 = vmatprep.subr.mxu1 %v254_v45  ;;  %v121_v50 = vld [vmem:[#allocation2 + $0x60] sm:$0xff]  ;;  %710 = vmatpush1.msra.mxu0 %v125_v46 }
  0x67   :  { %v250_v49 = vld [vmem:[#allocation2 + $0x468] sm:$0xff]  ;;  %v249_v51 = vld [vmem:[#allocation2 + $0x460] sm:$0xff]  ;;  %781 = vmatpush1.msra.mxu1 %v253_v47  ;;  %711 = vmatprep.subr.mxu0 %v122_v48 }
  0x68   :  { %v118_v52 = vld [vmem:[#allocation2 + $0x48] sm:$0xff]  ;;  %782 = vmatprep.subr.mxu1 %v250_v49  ;;  %v117_v54 = vld [vmem:[#allocation2 + $0x40] sm:$0xff]  ;;  %712 = vmatpush1.msra.mxu0 %v121_v50 }
  0x69   :  { %v246_v53 = vld [vmem:[#allocation2 + $0x448] sm:$0xff]  ;;  %v245_v55 = vld [vmem:[#allocation2 + $0x440] sm:$0xff]  ;;  %783 = vmatpush1.msra.mxu1 %v249_v51  ;;  %713 = vmatprep.subr.mxu0 %v118_v52  ;;  %v2038_v52 = vsub.s32 %v648_v42, %v2032_v41 }
  0x6a   :  { %v114_v56 = vld [vmem:[#allocation2 + $0x28] sm:$0xff]  ;;  %784 = vmatprep.subr.mxu1 %v246_v53  ;;  %v113_v58 = vld [vmem:[#allocation2 + $0x20] sm:$0xff]  ;;  %714 = vmatpush1.msra.mxu0 %v117_v54 }
  0x6b   :  { %v242_v57 = vld [vmem:[#allocation2 + $0x428] sm:$0xff]  ;;  %v241_v59 = vld [vmem:[#allocation2 + $0x420] sm:$0xff]  ;;  %785 = vmatpush1.msra.mxu1 %v245_v55  ;;  %715 = vmatprep.subr.mxu0 %v114_v56 }
  0x6c   :  { %v110_v60 = vld [vmem:[#allocation2 + $0x8] sm:$0xff]  ;;  %786 = vmatprep.subr.mxu1 %v242_v57  ;;  %v109_v62 = vld [vmem:[#allocation2] sm:$0xff]  ;;  %716 = vmatpush1.msra.mxu0 %v113_v58 }
  0x6d   :  { %v238_v61 = vld [vmem:[#allocation2 + $0x408] sm:$0xff]  ;;  %v237_v63 = vld [vmem:[#allocation2 + $0x400] sm:$0xff]  ;;  %787 = vmatpush1.msra.mxu1 %v241_v59  ;;  %717 = vmatprep.subr.mxu0 %v110_v60 }
  0x6e   :  { %v234_v0 = vld [vmem:[#allocation2 + $0x3e8] sm:$0xff]  ;;  %788 = vmatprep.subr.mxu1 %v238_v61  ;;  %v233_v2 = vld [vmem:[#allocation2 + $0x3e0] sm:$0xff]  ;;  %718 = vmatpush1.msra.mxu0 %v109_v62 }
  0x6f   :  { %v362_v1 = vld [vmem:[#allocation2 + $0x7e8] sm:$0xff]  ;;  %v361_v3 = vld [vmem:[#allocation2 + $0x7e0] sm:$0xff]  ;;  %789 = vmatpush1.msra.mxu1 %v237_v63  ;;  %719 = vmatprep.subr.mxu0 %v234_v0 }
  0x70   :  { %v230_v4 = vld [vmem:[#allocation2 + $0x3c8] sm:$0xff]  ;;  %790 = vmatprep.subr.mxu1 %v362_v1  ;;  %v229_v6 = vld [vmem:[#allocation2 + $0x3c0] sm:$0xff]  ;;  %720 = vmatpush2.msra.mxu0 %v233_v2 }
  0x71   :  { %v358_v5 = vld [vmem:[#allocation2 + $0x7c8] sm:$0xff]  ;;  %v357_v7 = vld [vmem:[#allocation2 + $0x7c0] sm:$0xff]  ;;  %791 = vmatpush2.msra.mxu1 %v361_v3  ;;  %721 = vmatprep.subr.mxu0 %v230_v4 }
  0x72   :  { %v226_v8 = vld [vmem:[#allocation2 + $0x3a8] sm:$0xff]  ;;  %792 = vmatprep.subr.mxu1 %v358_v5  ;;  %v225_v10 = vld [vmem:[#allocation2 + $0x3a0] sm:$0xff]  ;;  %722 = vmatpush2.msra.mxu0 %v229_v6 }
  0x73   :  { %v354_v9 = vld [vmem:[#allocation2 + $0x7a8] sm:$0xff]  ;;  %v353_v11 = vld [vmem:[#allocation2 + $0x7a0] sm:$0xff]  ;;  %793 = vmatpush2.msra.mxu1 %v357_v7  ;;  %723 = vmatprep.subr.mxu0 %v226_v8 }
  0x74   :  { %v222_v12 = vld [vmem:[#allocation2 + $0x388] sm:$0xff]  ;;  %794 = vmatprep.subr.mxu1 %v354_v9  ;;  %v221_v14 = vld [vmem:[#allocation2 + $0x380] sm:$0xff]  ;;  %724 = vmatpush2.msra.mxu0 %v225_v10 }
  0x75   :  { %v350_v13 = vld [vmem:[#allocation2 + $0x788] sm:$0xff]  ;;  %v349_v15 = vld [vmem:[#allocation2 + $0x780] sm:$0xff]  ;;  %795 = vmatpush2.msra.mxu1 %v353_v11  ;;  %725 = vmatprep.subr.mxu0 %v222_v12 }
  0x76   :  { %v218_v16 = vld [vmem:[#allocation2 + $0x368] sm:$0xff]  ;;  %796 = vmatprep.subr.mxu1 %v350_v13  ;;  %v217_v18 = vld [vmem:[#allocation2 + $0x360] sm:$0xff]  ;;  %726 = vmatpush2.msra.mxu0 %v221_v14 }
  0x77   :  { %v346_v17 = vld [vmem:[#allocation2 + $0x768] sm:$0xff]  ;;  %v345_v19 = vld [vmem:[#allocation2 + $0x760] sm:$0xff]  ;;  %797 = vmatpush2.msra.mxu1 %v349_v15  ;;  %727 = vmatprep.subr.mxu0 %v218_v16 }
  0x78   :  { %v214_v20 = vld [vmem:[#allocation2 + $0x348] sm:$0xff]  ;;  %798 = vmatprep.subr.mxu1 %v346_v17  ;;  %v213_v22 = vld [vmem:[#allocation2 + $0x340] sm:$0xff]  ;;  %728 = vmatpush2.msra.mxu0 %v217_v18 }
  0x79   :  { %v342_v21 = vld [vmem:[#allocation2 + $0x748] sm:$0xff]  ;;  %v341_v23 = vld [vmem:[#allocation2 + $0x740] sm:$0xff]  ;;  %799 = vmatpush2.msra.mxu1 %v345_v19  ;;  %729 = vmatprep.subr.mxu0 %v214_v20 }
  0x7a   :  { %v210_v24 = vld [vmem:[#allocation2 + $0x328] sm:$0xff]  ;;  %800 = vmatprep.subr.mxu1 %v342_v21  ;;  %v209_v26 = vld [vmem:[#allocation2 + $0x320] sm:$0xff]  ;;  %730 = vmatpush2.msra.mxu0 %v213_v22 }
  0x7b   :  { %v338_v25 = vld [vmem:[#allocation2 + $0x728] sm:$0xff]  ;;  %v337_v27 = vld [vmem:[#allocation2 + $0x720] sm:$0xff]  ;;  %801 = vmatpush2.msra.mxu1 %v341_v23  ;;  %731 = vmatprep.subr.mxu0 %v210_v24 }
  0x7c   :  { %v206_v28 = vld [vmem:[#allocation2 + $0x308] sm:$0xff]  ;;  %802 = vmatprep.subr.mxu1 %v338_v25  ;;  %v205_v33 = vld [vmem:[#allocation2 + $0x300] sm:$0xff]  ;;  %732 = vmatpush2.msra.mxu0 %v209_v26 }
  0x7d   :  { %v334_v29 = vld [vmem:[#allocation2 + $0x708] sm:$0xff]  ;;  %v333_v34 = vld [vmem:[#allocation2 + $0x700] sm:$0xff]  ;;  %803 = vmatpush2.msra.mxu1 %v337_v27  ;;  %733 = vmatprep.subr.mxu0 %v206_v28 }
  0x7e   :  { %v202_v35 = vld [vmem:[#allocation2 + $0x2e8] sm:$0xff]  ;;  %804 = vmatprep.subr.mxu1 %v334_v29  ;;  %v201_v37 = vld [vmem:[#allocation2 + $0x2e0] sm:$0xff]  ;;  %734 = vmatpush2.msra.mxu0 %v205_v33 }
  0x7f   :  { %v330_v36 = vld [vmem:[#allocation2 + $0x6e8] sm:$0xff]  ;;  %v329_v38 = vld [vmem:[#allocation2 + $0x6e0] sm:$0xff]  ;;  %805 = vmatpush2.msra.mxu1 %v333_v34  ;;  %735 = vmatprep.subr.mxu0 %v202_v35 }
  0x80   :  { %v198_v39 = vld [vmem:[#allocation2 + $0x2c8] sm:$0xff]  ;;  %806 = vmatprep.subr.mxu1 %v330_v36  ;;  %v197_v43 = vld [vmem:[#allocation2 + $0x2c0] sm:$0xff]  ;;  %736 = vmatpush2.msra.mxu0 %v201_v37 }
  0x81   :  { %v326_v40 = vld [vmem:[#allocation2 + $0x6c8] sm:$0xff]  ;;  %v325_v44 = vld [vmem:[#allocation2 + $0x6c0] sm:$0xff]  ;;  %807 = vmatpush2.msra.mxu1 %v329_v38  ;;  %737 = vmatprep.subr.mxu0 %v198_v39 }
  0x82   :  { %v194_v45 = vld [vmem:[#allocation2 + $0x2a8] sm:$0xff]  ;;  %808 = vmatprep.subr.mxu1 %v326_v40  ;;  %v193_v47 = vld [vmem:[#allocation2 + $0x2a0] sm:$0xff]  ;;  %738 = vmatpush2.msra.mxu0 %v197_v43 }
  0x83   :  { %v322_v46 = vld [vmem:[#allocation2 + $0x6a8] sm:$0xff]  ;;  %v321_v48 = vld [vmem:[#allocation2 + $0x6a0] sm:$0xff]  ;;  %809 = vmatpush2.msra.mxu1 %v325_v44  ;;  %739 = vmatprep.subr.mxu0 %v194_v45 }
  0x84   :  { %v107_v49 = vld [vmem:[%s2324_s0] sm:$0xff]  ;;  %v190_v50 = vld [vmem:[#allocation2 + $0x288] sm:$0xff]  ;;  %810 = vmatprep.subr.mxu1 %v322_v46  ;;  %740 = vmatpush2.msra.mxu0 %v193_v47 }
  0x85   :  { %v318_v51 = vld [vmem:[#allocation2 + $0x688] sm:$0xff]  ;;  %v189_v53 = vld [vmem:[#allocation2 + $0x280] sm:$0xff]  ;;  %811 = vmatpush2.msra.mxu1 %v321_v48  ;;  %v645_v57 = vcombine.high %v107_v49, %v107_v49  ;;  %741 = vmatprep.subr.mxu0 %v190_v50  ;;  %v2041_v62 = vrot.slane %v107_v49, %v2038_v52 }
  0x86   :  { %v317_v54 = vld [vmem:[#allocation2 + $0x680] sm:$0xff]  ;;  %v186_v55 = vld [vmem:[#allocation2 + $0x268] sm:$0xff]  ;;  %812 = vmatprep.subr.mxu1 %v318_v51  ;;  %742 = vmatpush2.msra.mxu0 %v189_v53 }
  0x87   :  { %v314_v56 = vld [vmem:[#allocation2 + $0x668] sm:$0xff]  ;;  %v185_v58 = vld [vmem:[#allocation2 + $0x260] sm:$0xff]  ;;  %813 = vmatpush2.msra.mxu1 %v317_v54  ;;  %743 = vmatprep.subr.mxu0 %v186_v55  ;;  %v2044_v3 = vrot.slane %v645_v57, %v2038_v52  ;;  %v2048_v8 = vcombine.high %v2041_v62, %v2041_v62 }
  0x88   :  { %v313_v59 = vld [vmem:[#allocation2 + $0x660] sm:$0xff]  ;;  %v182_v60 = vld [vmem:[#allocation2 + $0x248] sm:$0xff]  ;;  %814 = vmatprep.subr.mxu1 %v314_v56  ;;  %744 = vmatpush2.msra.mxu0 %v185_v58 }
  0x89   :  { %v310_v61 = vld [vmem:[#allocation2 + $0x648] sm:$0xff]  ;;  %v181_v63 = vld [vmem:[#allocation2 + $0x240] sm:$0xff]  ;;  %815 = vmatpush2.msra.mxu1 %v313_v59  ;;  %745 = vmatprep.subr.mxu0 %v182_v60  ;;  %v2052_v11 = vcombine.high %v2044_v3, %v2044_v3 }
  0x8a   :  { %v309_v0 = vld [vmem:[#allocation2 + $0x640] sm:$0xff]  ;;  %v178_v1 = vld [vmem:[#allocation2 + $0x228] sm:$0xff]  ;;  %816 = vmatprep.subr.mxu1 %v310_v61  ;;  %746 = vmatpush2.msra.mxu0 %v181_v63 }
  0x8b   :  { %v306_v2 = vld [vmem:[#allocation2 + $0x628] sm:$0xff]  ;;  %v177_v4 = vld [vmem:[#allocation2 + $0x220] sm:$0xff]  ;;  %817 = vmatpush2.msra.mxu1 %v309_v0  ;;  %747 = vmatprep.subr.mxu0 %v178_v1 }
  0x8c   :  { %v305_v5 = vld [vmem:[#allocation2 + $0x620] sm:$0xff]  ;;  %v174_v6 = vld [vmem:[#allocation2 + $0x208] sm:$0xff]  ;;  %818 = vmatprep.subr.mxu1 %v306_v2  ;;  %748 = vmatpush2.msra.mxu0 %v177_v4 }
  0x8d   :  { %v302_v7 = vld [vmem:[#allocation2 + $0x608] sm:$0xff]  ;;  %v173_v9 = vld [vmem:[#allocation2 + $0x200] sm:$0xff]  ;;  %819 = vmatpush2.msra.mxu1 %v305_v5  ;;  %749 = vmatprep.subr.mxu0 %v174_v6 }
  0x8e   :  { %v301_v10 = vld [vmem:[#allocation2 + $0x600] sm:$0xff]  ;;  %820 = vmatprep.subr.mxu1 %v302_v7  ;;  %v426_v12 = vld [vmem:[#allocation2 + $0x9e8] sm:$0xff]  ;;  %750 = vmatpush2.msra.mxu0 %v173_v9 }
  0x8f   :  { %751 = vmatprep.mubr.f32.mxu0 %v2048_v8  ;;  %v554_v13 = vld [vmem:[#allocation2 + $0xde8] sm:$0xff]  ;;  %821 = vmatpush2.msra.mxu1 %v301_v10  ;;  %v425_v14 = vld [vmem:[#allocation2 + $0x9e0] sm:$0xff] }
  0x90   :  { %752 = vmatmul.mubr.f32.vlgmr.msra.gmra.mxu0 %v2041_v62  ;;  %v553_v15 = vld [vmem:[#allocation2 + $0xde0] sm:$0xff]  ;;  %822 = vmatprep.mubr.f32.mxu1 %v2052_v11  ;;  %v422_v16 = vld [vmem:[#allocation2 + $0x9c8] sm:$0xff] }
  0x91   :  { %829 = vmatprep.subr.mxu0 %v426_v12  ;;  %v550_v17 = vld [vmem:[#allocation2 + $0xdc8] sm:$0xff]  ;;  %900 = vmatprep.subr.mxu1 %v554_v13  ;;  %v421_v18 = vld [vmem:[#allocation2 + $0x9c0] sm:$0xff] }
  0x92   :  { %823 = vmatmul.mubr.f32.vlgmr.msra.gmra.mxu1 %v2044_v3  ;;  %v549_v19 = vld [vmem:[#allocation2 + $0xdc0] sm:$0xff]  ;;  %830 = vmatpush1.msra.mxu0 %v425_v14  ;;  %v418_v20 = vld [vmem:[#allocation2 + $0x9a8] sm:$0xff] }
  0x93   :  { %901 = vmatpush1.msra.mxu1 %v553_v15  ;;  %v546_v21 = vld [vmem:[#allocation2 + $0xda8] sm:$0xff]  ;;  %831 = vmatprep.subr.mxu0 %v422_v16  ;;  %v417_v22 = vld [vmem:[#allocation2 + $0x9a0] sm:$0xff] }
  0x94   :  { %902 = vmatprep.subr.mxu1 %v550_v17  ;;  %v545_v23 = vld [vmem:[#allocation2 + $0xda0] sm:$0xff]  ;;  %832 = vmatpush1.msra.mxu0 %v421_v18  ;;  %v414_v24 = vld [vmem:[#allocation2 + $0x988] sm:$0xff] }
  0x95   :  { %903 = vmatpush1.msra.mxu1 %v549_v19  ;;  %v542_v25 = vld [vmem:[#allocation2 + $0xd88] sm:$0xff]  ;;  %833 = vmatprep.subr.mxu0 %v418_v20  ;;  %v413_v26 = vld [vmem:[#allocation2 + $0x980] sm:$0xff] }
  0x96   :  { %904 = vmatprep.subr.mxu1 %v546_v21  ;;  %v541_v27 = vld [vmem:[#allocation2 + $0xd80] sm:$0xff]  ;;  %834 = vmatpush1.msra.mxu0 %v417_v22  ;;  %v410_v28 = vld [vmem:[#allocation2 + $0x968] sm:$0xff] }
  0x97   :  { %905 = vmatpush1.msra.mxu1 %v545_v23  ;;  %v538_v29 = vld [vmem:[#allocation2 + $0xd68] sm:$0xff]  ;;  %835 = vmatprep.subr.mxu0 %v414_v24  ;;  %v409_v30 = vld [vmem:[#allocation2 + $0x960] sm:$0xff] }
  0x98   :  { %906 = vmatprep.subr.mxu1 %v542_v25  ;;  %v537_v31 = vld [vmem:[#allocation2 + $0xd60] sm:$0xff]  ;;  %836 = vmatpush1.msra.mxu0 %v413_v26  ;;  %v406_v32 = vld [vmem:[#allocation2 + $0x948] sm:$0xff] }
  0x99   :  { %907 = vmatpush1.msra.mxu1 %v541_v27  ;;  %v534_v33 = vld [vmem:[#allocation2 + $0xd48] sm:$0xff]  ;;  %837 = vmatprep.subr.mxu0 %v410_v28  ;;  %v405_v34 = vld [vmem:[#allocation2 + $0x940] sm:$0xff] }
  0x9a   :  { %908 = vmatprep.subr.mxu1 %v538_v29  ;;  %v533_v35 = vld [vmem:[#allocation2 + $0xd40] sm:$0xff]  ;;  %838 = vmatpush1.msra.mxu0 %v409_v30  ;;  %v402_v36 = vld [vmem:[#allocation2 + $0x928] sm:$0xff] }
  0x9b   :  { %909 = vmatpush1.msra.mxu1 %v537_v31  ;;  %v530_v37 = vld [vmem:[#allocation2 + $0xd28] sm:$0xff]  ;;  %839 = vmatprep.subr.mxu0 %v406_v32  ;;  %v401_v38 = vld [vmem:[#allocation2 + $0x920] sm:$0xff] }
  0x9c   :  { %910 = vmatprep.subr.mxu1 %v534_v33  ;;  %v529_v39 = vld [vmem:[#allocation2 + $0xd20] sm:$0xff]  ;;  %840 = vmatpush1.msra.mxu0 %v405_v34  ;;  %v398_v40 = vld [vmem:[#allocation2 + $0x908] sm:$0xff] }
  0x9d   :  { %911 = vmatpush1.msra.mxu1 %v533_v35  ;;  %v526_v42 = vld [vmem:[#allocation2 + $0xd08] sm:$0xff]  ;;  %841 = vmatprep.subr.mxu0 %v402_v36  ;;  %v397_v43 = vld [vmem:[#allocation2 + $0x900] sm:$0xff] }
  0x9e   :  { %912 = vmatprep.subr.mxu1 %v530_v37  ;;  %v525_v44 = vld [vmem:[#allocation2 + $0xd00] sm:$0xff]  ;;  %842 = vmatpush1.msra.mxu0 %v401_v38  ;;  %v394_v45 = vld [vmem:[#allocation2 + $0x8e8] sm:$0xff] }
  0x9f   :  { %913 = vmatpush1.msra.mxu1 %v529_v39  ;;  %v522_v46 = vld [vmem:[#allocation2 + $0xce8] sm:$0xff]  ;;  %843 = vmatprep.subr.mxu0 %v398_v40  ;;  %v393_v47 = vld [vmem:[#allocation2 + $0x8e0] sm:$0xff] }
  0xa0   :  { %914 = vmatprep.subr.mxu1 %v526_v42  ;;  %v521_v48 = vld [vmem:[#allocation2 + $0xce0] sm:$0xff]  ;;  %844 = vmatpush1.msra.mxu0 %v397_v43  ;;  %v390_v49 = vld [vmem:[#allocation2 + $0x8c8] sm:$0xff] }
  0xa1   :  { %915 = vmatpush1.msra.mxu1 %v525_v44  ;;  %v518_v50 = vld [vmem:[#allocation2 + $0xcc8] sm:$0xff]  ;;  %845 = vmatprep.subr.mxu0 %v394_v45  ;;  %v389_v51 = vld [vmem:[#allocation2 + $0x8c0] sm:$0xff] }
  0xa2   :  { %916 = vmatprep.subr.mxu1 %v522_v46  ;;  %v517_v53 = vld [vmem:[#allocation2 + $0xcc0] sm:$0xff]  ;;  %846 = vmatpush1.msra.mxu0 %v393_v47  ;;  %v386_v54 = vld [vmem:[#allocation2 + $0x8a8] sm:$0xff] }
  0xa3   :  { %917 = vmatpush1.msra.mxu1 %v521_v48  ;;  %v514_v55 = vld [vmem:[#allocation2 + $0xca8] sm:$0xff]  ;;  %847 = vmatprep.subr.mxu0 %v390_v49  ;;  %v385_v56 = vld [vmem:[#allocation2 + $0x8a0] sm:$0xff] }
  0xa4   :  { %918 = vmatprep.subr.mxu1 %v518_v50  ;;  %v513_v57 = vld [vmem:[#allocation2 + $0xca0] sm:$0xff]  ;;  %848 = vmatpush1.msra.mxu0 %v389_v51  ;;  %v382_v58 = vld [vmem:[#allocation2 + $0x888] sm:$0xff] }
  0xa5   :  { %919 = vmatpush1.msra.mxu1 %v517_v53  ;;  %v510_v59 = vld [vmem:[#allocation2 + $0xc88] sm:$0xff]  ;;  %849 = vmatprep.subr.mxu0 %v386_v54  ;;  %v381_v60 = vld [vmem:[#allocation2 + $0x880] sm:$0xff] }
  0xa6   :  { %920 = vmatprep.subr.mxu1 %v514_v55  ;;  %v509_v61 = vld [vmem:[#allocation2 + $0xc80] sm:$0xff]  ;;  %850 = vmatpush1.msra.mxu0 %v385_v56  ;;  %v378_v63 = vld [vmem:[#allocation2 + $0x868] sm:$0xff] }
  0xa7   :  { %921 = vmatpush1.msra.mxu1 %v513_v57  ;;  %v506_v0 = vld [vmem:[#allocation2 + $0xc68] sm:$0xff]  ;;  %851 = vmatprep.subr.mxu0 %v382_v58  ;;  %v377_v1 = vld [vmem:[#allocation2 + $0x860] sm:$0xff] }
  0xa8   :  { %922 = vmatprep.subr.mxu1 %v510_v59  ;;  %v505_v2 = vld [vmem:[#allocation2 + $0xc60] sm:$0xff]  ;;  %852 = vmatpush1.msra.mxu0 %v381_v60  ;;  %v374_v4 = vld [vmem:[#allocation2 + $0x848] sm:$0xff] }
  0xa9   :  { %923 = vmatpush1.msra.mxu1 %v509_v61  ;;  %v502_v5 = vld [vmem:[#allocation2 + $0xc48] sm:$0xff]  ;;  %853 = vmatprep.subr.mxu0 %v378_v63  ;;  %v373_v6 = vld [vmem:[#allocation2 + $0x840] sm:$0xff] }
  0xaa   :  { %924 = vmatprep.subr.mxu1 %v506_v0  ;;  %v501_v7 = vld [vmem:[#allocation2 + $0xc40] sm:$0xff]  ;;  %854 = vmatpush1.msra.mxu0 %v377_v1  ;;  %v370_v9 = vld [vmem:[#allocation2 + $0x828] sm:$0xff] }
  0xab   :  { %925 = vmatpush1.msra.mxu1 %v505_v2  ;;  %v498_v10 = vld [vmem:[#allocation2 + $0xc28] sm:$0xff]  ;;  %855 = vmatprep.subr.mxu0 %v374_v4  ;;  %v369_v12 = vld [vmem:[#allocation2 + $0x820] sm:$0xff] }
  0xac   :  { %926 = vmatprep.subr.mxu1 %v502_v5  ;;  %v497_v13 = vld [vmem:[#allocation2 + $0xc20] sm:$0xff]  ;;  %856 = vmatpush1.msra.mxu0 %v373_v6  ;;  %v366_v14 = vld [vmem:[#allocation2 + $0x808] sm:$0xff] }
  0xad   :  { %927 = vmatpush1.msra.mxu1 %v501_v7  ;;  %v494_v15 = vld [vmem:[#allocation2 + $0xc08] sm:$0xff]  ;;  %857 = vmatprep.subr.mxu0 %v370_v9  ;;  %v365_v16 = vld [vmem:[#allocation2 + $0x800] sm:$0xff] }
  0xae   :  { %928 = vmatprep.subr.mxu1 %v498_v10  ;;  %v493_v17 = vld [vmem:[#allocation2 + $0xc00] sm:$0xff]  ;;  %858 = vmatpush1.msra.mxu0 %v369_v12  ;;  %v490_v18 = vld [vmem:[#allocation2 + $0xbe8] sm:$0xff] }
  0xaf   :  { %929 = vmatpush1.msra.mxu1 %v497_v13  ;;  %v618_v19 = vld [vmem:[#allocation2 + $0xfe8] sm:$0xff]  ;;  %859 = vmatprep.subr.mxu0 %v366_v14  ;;  %v489_v20 = vld [vmem:[#allocation2 + $0xbe0] sm:$0xff] }
  0xb0   :  { %930 = vmatprep.subr.mxu1 %v494_v15  ;;  %v617_v21 = vld [vmem:[#allocation2 + $0xfe0] sm:$0xff]  ;;  %860 = vmatpush1.msra.mxu0 %v365_v16  ;;  %v486_v22 = vld [vmem:[#allocation2 + $0xbc8] sm:$0xff] }
  0xb1   :  { %931 = vmatpush1.msra.mxu1 %v493_v17  ;;  %v614_v23 = vld [vmem:[#allocation2 + $0xfc8] sm:$0xff]  ;;  %861 = vmatprep.subr.mxu0 %v490_v18  ;;  %v485_v24 = vld [vmem:[#allocation2 + $0xbc0] sm:$0xff] }
  0xb2   :  { %932 = vmatprep.subr.mxu1 %v618_v19  ;;  %v613_v25 = vld [vmem:[#allocation2 + $0xfc0] sm:$0xff]  ;;  %862 = vmatpush2.msra.mxu0 %v489_v20  ;;  %v482_v26 = vld [vmem:[#allocation2 + $0xba8] sm:$0xff] }
  0xb3   :  { %933 = vmatpush2.msra.mxu1 %v617_v21  ;;  %v610_v27 = vld [vmem:[#allocation2 + $0xfa8] sm:$0xff]  ;;  %863 = vmatprep.subr.mxu0 %v486_v22  ;;  %v481_v28 = vld [vmem:[#allocation2 + $0xba0] sm:$0xff] }
  0xb4   :  { %934 = vmatprep.subr.mxu1 %v614_v23  ;;  %v609_v29 = vld [vmem:[#allocation2 + $0xfa0] sm:$0xff]  ;;  %864 = vmatpush2.msra.mxu0 %v485_v24  ;;  %v478_v30 = vld [vmem:[#allocation2 + $0xb88] sm:$0xff] }
  0xb5   :  { %935 = vmatpush2.msra.mxu1 %v613_v25  ;;  %v606_v31 = vld [vmem:[#allocation2 + $0xf88] sm:$0xff]  ;;  %865 = vmatprep.subr.mxu0 %v482_v26  ;;  %v477_v32 = vld [vmem:[#allocation2 + $0xb80] sm:$0xff] }
  0xb6   :  { %936 = vmatprep.subr.mxu1 %v610_v27  ;;  %v605_v33 = vld [vmem:[#allocation2 + $0xf80] sm:$0xff]  ;;  %866 = vmatpush2.msra.mxu0 %v481_v28  ;;  %v474_v34 = vld [vmem:[#allocation2 + $0xb68] sm:$0xff] }
  0xb7   :  { %937 = vmatpush2.msra.mxu1 %v609_v29  ;;  %v602_v35 = vld [vmem:[#allocation2 + $0xf68] sm:$0xff]  ;;  %867 = vmatprep.subr.mxu0 %v478_v30  ;;  %v473_v36 = vld [vmem:[#allocation2 + $0xb60] sm:$0xff]  ;;  %v172_v29 = vld [vmem:[#allocation2 + $0x1f8] sm:$0xff] }
  0xb8   :  { %938 = vmatprep.subr.mxu1 %v606_v31  ;;  %v601_v37 = vld [vmem:[#allocation2 + $0xf60] sm:$0xff]  ;;  %868 = vmatpush2.msra.mxu0 %v477_v32  ;;  %v470_v38 = vld [vmem:[#allocation2 + $0xb48] sm:$0xff]  ;;  %v300_v30 = vld [vmem:[#allocation2 + $0x5f8] sm:$0xff] }
  0xb9   :  { %939 = vmatpush2.msra.mxu1 %v605_v33  ;;  %v598_v39 = vld [vmem:[#allocation2 + $0xf48] sm:$0xff]  ;;  %869 = vmatprep.subr.mxu0 %v474_v34  ;;  %v469_v40 = vld [vmem:[#allocation2 + $0xb40] sm:$0xff]  ;;  %v171_v31 = vld [vmem:[#allocation2 + $0x1f0] sm:$0xff] }
  0xba   :  { %940 = vmatprep.subr.mxu1 %v602_v35  ;;  %v597_v42 = vld [vmem:[#allocation2 + $0xf40] sm:$0xff]  ;;  %870 = vmatpush2.msra.mxu0 %v473_v36  ;;  %v466_v43 = vld [vmem:[#allocation2 + $0xb28] sm:$0xff]  ;;  %v299_v32 = vld [vmem:[#allocation2 + $0x5f0] sm:$0xff] }
  0xbb   :  { %941 = vmatpush2.msra.mxu1 %v601_v37  ;;  %v594_v44 = vld [vmem:[#allocation2 + $0xf28] sm:$0xff]  ;;  %871 = vmatprep.subr.mxu0 %v470_v38  ;;  %v465_v45 = vld [vmem:[#allocation2 + $0xb20] sm:$0xff]  ;;  %v168_v33 = vld [vmem:[#allocation2 + $0x1d8] sm:$0xff] }
  0xbc   :  { %942 = vmatprep.subr.mxu1 %v598_v39  ;;  %v593_v46 = vld [vmem:[#allocation2 + $0xf20] sm:$0xff]  ;;  %872 = vmatpush2.msra.mxu0 %v469_v40  ;;  %v462_v47 = vld [vmem:[#allocation2 + $0xb08] sm:$0xff]  ;;  %v296_v34 = vld [vmem:[#allocation2 + $0x5d8] sm:$0xff] }
  0xbd   :  { %943 = vmatpush2.msra.mxu1 %v597_v42  ;;  %v590_v48 = vld [vmem:[#allocation2 + $0xf08] sm:$0xff]  ;;  %873 = vmatprep.subr.mxu0 %v466_v43  ;;  %v461_v49 = vld [vmem:[#allocation2 + $0xb00] sm:$0xff]  ;;  %v167_v35 = vld [vmem:[#allocation2 + $0x1d0] sm:$0xff] }
  0xbe   :  { %944 = vmatprep.subr.mxu1 %v594_v44  ;;  %v589_v50 = vld [vmem:[#allocation2 + $0xf00] sm:$0xff]  ;;  %874 = vmatpush2.msra.mxu0 %v465_v45  ;;  %v458_v51 = vld [vmem:[#allocation2 + $0xae8] sm:$0xff]  ;;  %v295_v36 = vld [vmem:[#allocation2 + $0x5d0] sm:$0xff] }
  0xbf   :  { %945 = vmatpush2.msra.mxu1 %v593_v46  ;;  %v586_v53 = vld [vmem:[#allocation2 + $0xee8] sm:$0xff]  ;;  %875 = vmatprep.subr.mxu0 %v462_v47  ;;  %v457_v54 = vld [vmem:[#allocation2 + $0xae0] sm:$0xff]  ;;  %v164_v37 = vld [vmem:[#allocation2 + $0x1b8] sm:$0xff] }
  0xc0   :  { %946 = vmatprep.subr.mxu1 %v590_v48  ;;  %v585_v55 = vld [vmem:[#allocation2 + $0xee0] sm:$0xff]  ;;  %876 = vmatpush2.msra.mxu0 %v461_v49  ;;  %v454_v56 = vld [vmem:[#allocation2 + $0xac8] sm:$0xff]  ;;  %v292_v38 = vld [vmem:[#allocation2 + $0x5b8] sm:$0xff] }
  0xc1   :  { %947 = vmatpush2.msra.mxu1 %v589_v50  ;;  %v582_v57 = vld [vmem:[#allocation2 + $0xec8] sm:$0xff]  ;;  %877 = vmatprep.subr.mxu0 %v458_v51  ;;  %v453_v58 = vld [vmem:[#allocation2 + $0xac0] sm:$0xff]  ;;  %v163_v39 = vld [vmem:[#allocation2 + $0x1b0] sm:$0xff] }
  0xc2   :  { %948 = vmatprep.subr.mxu1 %v586_v53  ;;  %v581_v59 = vld [vmem:[#allocation2 + $0xec0] sm:$0xff]  ;;  %878 = vmatpush2.msra.mxu0 %v457_v54  ;;  %v450_v60 = vld [vmem:[#allocation2 + $0xaa8] sm:$0xff]  ;;  %v291_v40 = vld [vmem:[#allocation2 + $0x5b0] sm:$0xff] }
  0xc3   :  { %949 = vmatpush2.msra.mxu1 %v585_v55  ;;  %v578_v61 = vld [vmem:[#allocation2 + $0xea8] sm:$0xff]  ;;  %879 = vmatprep.subr.mxu0 %v454_v56  ;;  %v449_v63 = vld [vmem:[#allocation2 + $0xaa0] sm:$0xff]  ;;  %v160_v42 = vld [vmem:[#allocation2 + $0x198] sm:$0xff] }
  0xc4   :  { %950 = vmatprep.subr.mxu1 %v582_v57  ;;  %v577_v0 = vld [vmem:[#allocation2 + $0xea0] sm:$0xff]  ;;  %v108_v1 = vld [vmem:[%s2324_s0 + $0x8] sm:$0xff]  ;;  %880 = vmatpush2.msra.mxu0 %v453_v58  ;;  %v288_v43 = vld [vmem:[#allocation2 + $0x598] sm:$0xff] }
  0xc5   :  { %951 = vmatpush2.msra.mxu1 %v581_v59  ;;  %v446_v2 = vld [vmem:[#allocation2 + $0xa88] sm:$0xff]  ;;  %881 = vmatprep.subr.mxu0 %v450_v60  ;;  %v445_v5 = vld [vmem:[#allocation2 + $0xa80] sm:$0xff]  ;;  %v662_v10 = vcombine.high %v108_v1, %v108_v1  ;;  %v2062_v16 = vrot.slane %v108_v1, %v2038_v52  ;;  %v159_v44 = vld [vmem:[#allocation2 + $0x190] sm:$0xff] }
  0xc6   :  { %v574_v4 = vld [vmem:[#allocation2 + $0xe88] sm:$0xff]  ;;  %952 = vmatprep.subr.mxu1 %v578_v61  ;;  %v573_v6 = vld [vmem:[#allocation2 + $0xe80] sm:$0xff]  ;;  %882 = vmatpush2.msra.mxu0 %v449_v63  ;;  %v287_v45 = vld [vmem:[#allocation2 + $0x590] sm:$0xff] }
  0xc7   :  { %953 = vmatpush2.msra.mxu1 %v577_v0  ;;  %v442_v7 = vld [vmem:[#allocation2 + $0xa68] sm:$0xff]  ;;  %883 = vmatprep.subr.mxu0 %v446_v2  ;;  %v441_v12 = vld [vmem:[#allocation2 + $0xa60] sm:$0xff]  ;;  %v2065_v21 = vrot.slane %v662_v10, %v2038_v52  ;;  %v2069_v26 = vcombine.high %v2062_v16, %v2062_v16  ;;  %v156_v46 = vld [vmem:[#allocation2 + $0x178] sm:$0xff] }
  0xc8   :  { %v570_v9 = vld [vmem:[#allocation2 + $0xe68] sm:$0xff]  ;;  %954 = vmatprep.subr.mxu1 %v574_v4  ;;  %v569_v13 = vld [vmem:[#allocation2 + $0xe60] sm:$0xff]  ;;  %884 = vmatpush2.msra.mxu0 %v445_v5  ;;  %v284_v47 = vld [vmem:[#allocation2 + $0x578] sm:$0xff] }
  0xc9   :  { %955 = vmatpush2.msra.mxu1 %v573_v6  ;;  %v438_v14 = vld [vmem:[#allocation2 + $0xa48] sm:$0xff]  ;;  %885 = vmatprep.subr.mxu0 %v442_v7  ;;  %v437_v17 = vld [vmem:[#allocation2 + $0xa40] sm:$0xff]  ;;  %v2073_v52 = vcombine.high %v2065_v21, %v2065_v21  ;;  %v155_v48 = vld [vmem:[#allocation2 + $0x170] sm:$0xff] }
  0xca   :  { %v566_v15 = vld [vmem:[#allocation2 + $0xe48] sm:$0xff]  ;;  %956 = vmatprep.subr.mxu1 %v570_v9  ;;  %v565_v18 = vld [vmem:[#allocation2 + $0xe40] sm:$0xff]  ;;  %886 = vmatpush2.msra.mxu0 %v441_v12  ;;  %v283_v49 = vld [vmem:[#allocation2 + $0x570] sm:$0xff] }
  0xcb   :  { %957 = vmatpush2.msra.mxu1 %v569_v13  ;;  %v434_v19 = vld [vmem:[#allocation2 + $0xa28] sm:$0xff]  ;;  %887 = vmatprep.subr.mxu0 %v438_v14  ;;  %v433_v22 = vld [vmem:[#allocation2 + $0xa20] sm:$0xff]  ;;  %v152_v50 = vld [vmem:[#allocation2 + $0x158] sm:$0xff] }
  0xcc   :  { %v562_v20 = vld [vmem:[#allocation2 + $0xe28] sm:$0xff]  ;;  %958 = vmatprep.subr.mxu1 %v566_v15  ;;  %v561_v23 = vld [vmem:[#allocation2 + $0xe20] sm:$0xff]  ;;  %888 = vmatpush2.msra.mxu0 %v437_v17  ;;  %v280_v51 = vld [vmem:[#allocation2 + $0x558] sm:$0xff] }
  0xcd   :  { %959 = vmatpush2.msra.mxu1 %v565_v18  ;;  %v430_v24 = vld [vmem:[#allocation2 + $0xa08] sm:$0xff]  ;;  %889 = vmatprep.subr.mxu0 %v434_v19  ;;  %v429_v27 = vld [vmem:[#allocation2 + $0xa00] sm:$0xff]  ;;  %v151_v53 = vld [vmem:[#allocation2 + $0x150] sm:$0xff] }
  0xce   :  { %v558_v25 = vld [vmem:[#allocation2 + $0xe08] sm:$0xff]  ;;  %960 = vmatprep.subr.mxu1 %v562_v20  ;;  %890 = vmatpush2.msra.mxu0 %v433_v22  ;;  %v557_v28 = vld [vmem:[#allocation2 + $0xe00] sm:$0xff]  ;;  %v279_v54 = vld [vmem:[#allocation2 + $0x550] sm:$0xff] }
  0xcf   :  { %961 = vmatpush2.msra.mxu1 %v561_v23  ;;  %891 = vmatprep.subr.mxu0 %v430_v24  ;;  %v148_v55 = vld [vmem:[#allocation2 + $0x138] sm:$0xff]  ;;  %v147_v57 = vld [vmem:[#allocation2 + $0x130] sm:$0xff] }
  0xd0   :  { %962 = vmatprep.subr.mxu1 %v558_v25  ;;  %892 = vmatpush2.msra.mxu0 %v429_v27  ;;  %v276_v56 = vld [vmem:[#allocation2 + $0x538] sm:$0xff]  ;;  %v275_v58 = vld [vmem:[#allocation2 + $0x530] sm:$0xff] }
  0xd1   :  { %893 = vmatprep.mubr.f32.mxu0 %v2069_v26  ;;  %963 = vmatpush2.msra.mxu1 %v557_v28  ;;  %v144_v59 = vld [vmem:[#allocation2 + $0x118] sm:$0xff]  ;;  %v143_v61 = vld [vmem:[#allocation2 + $0x110] sm:$0xff] }
  0xd2   :  { %894 = vmatmul.mubr.f32.vlgmr.msra.gmra.mxu0 %v2062_v16  ;;  %964 = vmatprep.mubr.f32.mxu1 %v2073_v52  ;;  %v272_v60 = vld [vmem:[#allocation2 + $0x518] sm:$0xff]  ;;  %v271_v63 = vld [vmem:[#allocation2 + $0x510] sm:$0xff] }
  0xd3   :  { %971 = vmatprep.subr.mxu0 %v172_v29  ;;  %1042 = vmatprep.subr.mxu1 %v300_v30  ;;  %v140_v0 = vld [vmem:[#allocation2 + $0xf8] sm:$0xff]  ;;  %v139_v2 = vld [vmem:[#allocation2 + $0xf0] sm:$0xff] }
  0xd4   :  { %965 = vmatmul.mubr.f32.vlgmr.msra.gmra.mxu1 %v2065_v21  ;;  %972 = vmatpush1.msra.mxu0 %v171_v31  ;;  %v268_v1 = vld [vmem:[#allocation2 + $0x4f8] sm:$0xff]  ;;  %v267_v4 = vld [vmem:[#allocation2 + $0x4f0] sm:$0xff] }
  0xd5   :  { %1043 = vmatpush1.msra.mxu1 %v299_v32  ;;  %973 = vmatprep.subr.mxu0 %v168_v33  ;;  %v136_v5 = vld [vmem:[#allocation2 + $0xd8] sm:$0xff]  ;;  %v135_v7 = vld [vmem:[#allocation2 + $0xd0] sm:$0xff] }
  0xd6   :  { %1044 = vmatprep.subr.mxu1 %v296_v34  ;;  %974 = vmatpush1.msra.mxu0 %v167_v35  ;;  %v264_v6 = vld [vmem:[#allocation2 + $0x4d8] sm:$0xff]  ;;  %v263_v9 = vld [vmem:[#allocation2 + $0x4d0] sm:$0xff] }
  0xd7   :  { %1045 = vmatpush1.msra.mxu1 %v295_v36  ;;  %975 = vmatprep.subr.mxu0 %v164_v37  ;;  %v132_v10 = vld [vmem:[#allocation2 + $0xb8] sm:$0xff]  ;;  %v131_v13 = vld [vmem:[#allocation2 + $0xb0] sm:$0xff] }
  0xd8   :  { %1046 = vmatprep.subr.mxu1 %v292_v38  ;;  %976 = vmatpush1.msra.mxu0 %v163_v39  ;;  %v260_v12 = vld [vmem:[#allocation2 + $0x4b8] sm:$0xff]  ;;  %v259_v14 = vld [vmem:[#allocation2 + $0x4b0] sm:$0xff] }
  0xd9   :  { %1047 = vmatpush1.msra.mxu1 %v291_v40  ;;  %977 = vmatprep.subr.mxu0 %v160_v42  ;;  %v128_v15 = vld [vmem:[#allocation2 + $0x98] sm:$0xff]  ;;  %v127_v18 = vld [vmem:[#allocation2 + $0x90] sm:$0xff] }
  0xda   :  { %1048 = vmatprep.subr.mxu1 %v288_v43  ;;  %978 = vmatpush1.msra.mxu0 %v159_v44  ;;  %v256_v17 = vld [vmem:[#allocation2 + $0x498] sm:$0xff]  ;;  %v255_v19 = vld [vmem:[#allocation2 + $0x490] sm:$0xff] }
  0xdb   :  { %1049 = vmatpush1.msra.mxu1 %v287_v45  ;;  %979 = vmatprep.subr.mxu0 %v156_v46  ;;  %v124_v20 = vld [vmem:[#allocation2 + $0x78] sm:$0xff]  ;;  %v123_v23 = vld [vmem:[#allocation2 + $0x70] sm:$0xff] }
  0xdc   :  { %1050 = vmatprep.subr.mxu1 %v284_v47  ;;  %980 = vmatpush1.msra.mxu0 %v155_v48  ;;  %v252_v22 = vld [vmem:[#allocation2 + $0x478] sm:$0xff]  ;;  %v251_v24 = vld [vmem:[#allocation2 + $0x470] sm:$0xff] }
  0xdd   :  { %1051 = vmatpush1.msra.mxu1 %v283_v49  ;;  %981 = vmatprep.subr.mxu0 %v152_v50  ;;  %v120_v25 = vld [vmem:[#allocation2 + $0x58] sm:$0xff]  ;;  %v119_v28 = vld [vmem:[#allocation2 + $0x50] sm:$0xff] }
  0xde   :  { %1052 = vmatprep.subr.mxu1 %v280_v51  ;;  %982 = vmatpush1.msra.mxu0 %v151_v53  ;;  %v248_v27 = vld [vmem:[#allocation2 + $0x458] sm:$0xff]  ;;  %v247_v29 = vld [vmem:[#allocation2 + $0x450] sm:$0xff] }
  0xdf   :  { %1053 = vmatpush1.msra.mxu1 %v279_v54  ;;  %983 = vmatprep.subr.mxu0 %v148_v55  ;;  %v116_v30 = vld [vmem:[#allocation2 + $0x38] sm:$0xff]  ;;  %v115_v32 = vld [vmem:[#allocation2 + $0x30] sm:$0xff] }
  0xe0   :  { %1054 = vmatprep.subr.mxu1 %v276_v56  ;;  %984 = vmatpush1.msra.mxu0 %v147_v57  ;;  %v244_v31 = vld [vmem:[#allocation2 + $0x438] sm:$0xff]  ;;  %v243_v33 = vld [vmem:[#allocation2 + $0x430] sm:$0xff] }
  0xe1   :  { %1055 = vmatpush1.msra.mxu1 %v275_v58  ;;  %985 = vmatprep.subr.mxu0 %v144_v59  ;;  %v112_v34 = vld [vmem:[#allocation2 + $0x18] sm:$0xff]  ;;  %v111_v36 = vld [vmem:[#allocation2 + $0x10] sm:$0xff] }
  0xe2   :  { %1056 = vmatprep.subr.mxu1 %v272_v60  ;;  %986 = vmatpush1.msra.mxu0 %v143_v61  ;;  %v240_v35 = vld [vmem:[#allocation2 + $0x418] sm:$0xff]  ;;  %v239_v37 = vld [vmem:[#allocation2 + $0x410] sm:$0xff] }
  0xe3   :  { %1057 = vmatpush1.msra.mxu1 %v271_v63  ;;  %987 = vmatprep.subr.mxu0 %v140_v0  ;;  %v236_v38 = vld [vmem:[#allocation2 + $0x3f8] sm:$0xff]  ;;  %v235_v40 = vld [vmem:[#allocation2 + $0x3f0] sm:$0xff] }
  0xe4   :  { %1058 = vmatprep.subr.mxu1 %v268_v1  ;;  %988 = vmatpush1.msra.mxu0 %v139_v2  ;;  %v364_v39 = vld [vmem:[#allocation2 + $0x7f8] sm:$0xff]  ;;  %v363_v42 = vld [vmem:[#allocation2 + $0x7f0] sm:$0xff] }
  0xe5   :  { %1059 = vmatpush1.msra.mxu1 %v267_v4  ;;  %989 = vmatprep.subr.mxu0 %v136_v5  ;;  %v232_v43 = vld [vmem:[#allocation2 + $0x3d8] sm:$0xff]  ;;  %v231_v45 = vld [vmem:[#allocation2 + $0x3d0] sm:$0xff] }
  0xe6   :  { %1060 = vmatprep.subr.mxu1 %v264_v6  ;;  %990 = vmatpush1.msra.mxu0 %v135_v7  ;;  %v360_v44 = vld [vmem:[#allocation2 + $0x7d8] sm:$0xff]  ;;  %v359_v46 = vld [vmem:[#allocation2 + $0x7d0] sm:$0xff] }
  0xe7   :  { %1061 = vmatpush1.msra.mxu1 %v263_v9  ;;  %991 = vmatprep.subr.mxu0 %v132_v10  ;;  %v228_v47 = vld [vmem:[#allocation2 + $0x3b8] sm:$0xff]  ;;  %v227_v49 = vld [vmem:[#allocation2 + $0x3b0] sm:$0xff] }
  0xe8   :  { %1062 = vmatprep.subr.mxu1 %v260_v12  ;;  %992 = vmatpush1.msra.mxu0 %v131_v13  ;;  %v356_v48 = vld [vmem:[#allocation2 + $0x7b8] sm:$0xff]  ;;  %v355_v50 = vld [vmem:[#allocation2 + $0x7b0] sm:$0xff] }
  0xe9   :  { %1063 = vmatpush1.msra.mxu1 %v259_v14  ;;  %993 = vmatprep.subr.mxu0 %v128_v15  ;;  %v224_v51 = vld [vmem:[#allocation2 + $0x398] sm:$0xff]  ;;  %v223_v54 = vld [vmem:[#allocation2 + $0x390] sm:$0xff] }
  0xea   :  { %1064 = vmatprep.subr.mxu1 %v256_v17  ;;  %994 = vmatpush1.msra.mxu0 %v127_v18  ;;  %v352_v53 = vld [vmem:[#allocation2 + $0x798] sm:$0xff]  ;;  %v351_v55 = vld [vmem:[#allocation2 + $0x790] sm:$0xff] }
  0xeb   :  { %1065 = vmatpush1.msra.mxu1 %v255_v19  ;;  %995 = vmatprep.subr.mxu0 %v124_v20  ;;  %v220_v56 = vld [vmem:[#allocation2 + $0x378] sm:$0xff]  ;;  %v219_v58 = vld [vmem:[#allocation2 + $0x370] sm:$0xff] }
  0xec   :  { %1066 = vmatprep.subr.mxu1 %v252_v22  ;;  %996 = vmatpush1.msra.mxu0 %v123_v23  ;;  %v348_v57 = vld [vmem:[#allocation2 + $0x778] sm:$0xff]  ;;  %v347_v59 = vld [vmem:[#allocation2 + $0x770] sm:$0xff] }
  0xed   :  { %1067 = vmatpush1.msra.mxu1 %v251_v24  ;;  %997 = vmatprep.subr.mxu0 %v120_v25  ;;  %v216_v60 = vld [vmem:[#allocation2 + $0x358] sm:$0xff]  ;;  %v215_v63 = vld [vmem:[#allocation2 + $0x350] sm:$0xff] }
  0xee   :  { %1068 = vmatprep.subr.mxu1 %v248_v27  ;;  %998 = vmatpush1.msra.mxu0 %v119_v28  ;;  %v344_v61 = vld [vmem:[#allocation2 + $0x758] sm:$0xff]  ;;  %v343_v0 = vld [vmem:[#allocation2 + $0x750] sm:$0xff] }
  0xef   :  { %1069 = vmatpush1.msra.mxu1 %v247_v29  ;;  %999 = vmatprep.subr.mxu0 %v116_v30  ;;  %v212_v1 = vld [vmem:[#allocation2 + $0x338] sm:$0xff]  ;;  %v211_v4 = vld [vmem:[#allocation2 + $0x330] sm:$0xff] }
  0xf0   :  { %1070 = vmatprep.subr.mxu1 %v244_v31  ;;  %1000 = vmatpush1.msra.mxu0 %v115_v32  ;;  %v340_v2 = vld [vmem:[#allocation2 + $0x738] sm:$0xff]  ;;  %v339_v5 = vld [vmem:[#allocation2 + $0x730] sm:$0xff] }
  0xf1   :  { %1071 = vmatpush1.msra.mxu1 %v243_v33  ;;  %1001 = vmatprep.subr.mxu0 %v112_v34  ;;  %v208_v6 = vld [vmem:[#allocation2 + $0x318] sm:$0xff]  ;;  %v207_v9 = vld [vmem:[#allocation2 + $0x310] sm:$0xff] }
  0xf2   :  { %1072 = vmatprep.subr.mxu1 %v240_v35  ;;  %1002 = vmatpush1.msra.mxu0 %v111_v36  ;;  %v336_v7 = vld [vmem:[#allocation2 + $0x718] sm:$0xff]  ;;  %v335_v10 = vld [vmem:[#allocation2 + $0x710] sm:$0xff] }
  0xf3   :  { %1073 = vmatpush1.msra.mxu1 %v239_v37  ;;  %1003 = vmatprep.subr.mxu0 %v236_v38  ;;  %v204_v12 = vld [vmem:[#allocation2 + $0x2f8] sm:$0xff]  ;;  %v203_v14 = vld [vmem:[#allocation2 + $0x2f0] sm:$0xff] }
  0xf4   :  { %1074 = vmatprep.subr.mxu1 %v364_v39  ;;  %1004 = vmatpush2.msra.mxu0 %v235_v40  ;;  %v332_v13 = vld [vmem:[#allocation2 + $0x6f8] sm:$0xff]  ;;  %v331_v15 = vld [vmem:[#allocation2 + $0x6f0] sm:$0xff] }
  0xf5   :  { %1075 = vmatpush2.msra.mxu1 %v363_v42  ;;  %1005 = vmatprep.subr.mxu0 %v232_v43  ;;  %v200_v17 = vld [vmem:[#allocation2 + $0x2d8] sm:$0xff]  ;;  %v199_v19 = vld [vmem:[#allocation2 + $0x2d0] sm:$0xff] }
  0xf6   :  { %1076 = vmatprep.subr.mxu1 %v360_v44  ;;  %1006 = vmatpush2.msra.mxu0 %v231_v45  ;;  %v328_v18 = vld [vmem:[#allocation2 + $0x6d8] sm:$0xff]  ;;  %v327_v20 = vld [vmem:[#allocation2 + $0x6d0] sm:$0xff] }
  0xf7   :  { %1077 = vmatpush2.msra.mxu1 %v359_v46  ;;  %1007 = vmatprep.subr.mxu0 %v228_v47  ;;  %v196_v22 = vld [vmem:[#allocation2 + $0x2b8] sm:$0xff]  ;;  %v195_v24 = vld [vmem:[#allocation2 + $0x2b0] sm:$0xff] }
  0xf8   :  { %1078 = vmatprep.subr.mxu1 %v356_v48  ;;  %1008 = vmatpush2.msra.mxu0 %v227_v49  ;;  %v324_v23 = vld [vmem:[#allocation2 + $0x6b8] sm:$0xff]  ;;  %v323_v25 = vld [vmem:[#allocation2 + $0x6b0] sm:$0xff] }
  0xf9   :  { %1079 = vmatpush2.msra.mxu1 %v355_v50  ;;  %1009 = vmatprep.subr.mxu0 %v224_v51  ;;  %v192_v27 = vld [vmem:[#allocation2 + $0x298] sm:$0xff]  ;;  %v191_v29 = vld [vmem:[#allocation2 + $0x290] sm:$0xff] }
  0xfa   :  { %1080 = vmatprep.subr.mxu1 %v352_v53  ;;  %1010 = vmatpush2.msra.mxu0 %v223_v54  ;;  %v320_v28 = vld [vmem:[#allocation2 + $0x698] sm:$0xff]  ;;  %v319_v30 = vld [vmem:[#allocation2 + $0x690] sm:$0xff] }
  0xfb   :  { %1081 = vmatpush2.msra.mxu1 %v351_v55  ;;  %1011 = vmatprep.subr.mxu0 %v220_v56  ;;  %v188_v31 = vld [vmem:[#allocation2 + $0x278] sm:$0xff]  ;;  %v187_v33 = vld [vmem:[#allocation2 + $0x270] sm:$0xff] }
  0xfc   :  { %1082 = vmatprep.subr.mxu1 %v348_v57  ;;  %1012 = vmatpush2.msra.mxu0 %v219_v58  ;;  %v316_v32 = vld [vmem:[#allocation2 + $0x678] sm:$0xff]  ;;  %v315_v34 = vld [vmem:[#allocation2 + $0x670] sm:$0xff] }
  0xfd   :  { %1083 = vmatpush2.msra.mxu1 %v347_v59  ;;  %1013 = vmatprep.subr.mxu0 %v216_v60  ;;  %v184_v35 = vld [vmem:[#allocation2 + $0x258] sm:$0xff]  ;;  %v183_v37 = vld [vmem:[#allocation2 + $0x250] sm:$0xff] }
  0xfe   :  { %1084 = vmatprep.subr.mxu1 %v344_v61  ;;  %1014 = vmatpush2.msra.mxu0 %v215_v63  ;;  %v312_v36 = vld [vmem:[#allocation2 + $0x658] sm:$0xff]  ;;  %v311_v38 = vld [vmem:[#allocation2 + $0x650] sm:$0xff] }
  0xff   :  { %1085 = vmatpush2.msra.mxu1 %v343_v0  ;;  %1015 = vmatprep.subr.mxu0 %v212_v1  ;;  %v180_v39 = vld [vmem:[#allocation2 + $0x238] sm:$0xff]  ;;  %v179_v42 = vld [vmem:[#allocation2 + $0x230] sm:$0xff] }
 0x100   :  { %1086 = vmatprep.subr.mxu1 %v340_v2  ;;  %1016 = vmatpush2.msra.mxu0 %v211_v4  ;;  %v308_v40 = vld [vmem:[#allocation2 + $0x638] sm:$0xff]  ;;  %v307_v43 = vld [vmem:[#allocation2 + $0x630] sm:$0xff] }
 0x101   :  { %1087 = vmatpush2.msra.mxu1 %v339_v5  ;;  %1017 = vmatprep.subr.mxu0 %v208_v6  ;;  %v176_v44 = vld [vmem:[#allocation2 + $0x218] sm:$0xff]  ;;  %v175_v46 = vld [vmem:[#allocation2 + $0x210] sm:$0xff] }
 0x102   :  { %1088 = vmatprep.subr.mxu1 %v336_v7  ;;  %1018 = vmatpush2.msra.mxu0 %v207_v9  ;;  %v304_v45 = vld [vmem:[#allocation2 + $0x618] sm:$0xff]  ;;  %v303_v47 = vld [vmem:[#allocation2 + $0x610] sm:$0xff] }
 0x103   :  { %1089 = vmatpush2.msra.mxu1 %v335_v10  ;;  %1019 = vmatprep.subr.mxu0 %v204_v12  ;;  %v428_v48 = vld [vmem:[#allocation2 + $0x9f8] sm:$0xff]  ;;  %v427_v50 = vld [vmem:[#allocation2 + $0x9f0] sm:$0xff] }
 0x104   :  { %1090 = vmatprep.subr.mxu1 %v332_v13  ;;  %1020 = vmatpush2.msra.mxu0 %v203_v14  ;;  %v556_v49 = vld [vmem:[#allocation2 + $0xdf8] sm:$0xff]  ;;  %v555_v51 = vld [vmem:[#allocation2 + $0xdf0] sm:$0xff] }
 0x105   :  { %1091 = vmatpush2.msra.mxu1 %v331_v15  ;;  %1021 = vmatprep.subr.mxu0 %v200_v17  ;;  %v424_v53 = vld [vmem:[#allocation2 + $0x9d8] sm:$0xff]  ;;  %v423_v55 = vld [vmem:[#allocation2 + $0x9d0] sm:$0xff] }
 0x106   :  { %1092 = vmatprep.subr.mxu1 %v328_v18  ;;  %1022 = vmatpush2.msra.mxu0 %v199_v19  ;;  %v552_v54 = vld [vmem:[#allocation2 + $0xdd8] sm:$0xff]  ;;  %v551_v56 = vld [vmem:[#allocation2 + $0xdd0] sm:$0xff] }
 0x107   :  { %1093 = vmatpush2.msra.mxu1 %v327_v20  ;;  %1023 = vmatprep.subr.mxu0 %v196_v22  ;;  %v420_v57 = vld [vmem:[#allocation2 + $0x9b8] sm:$0xff]  ;;  %v419_v58 = vld [vmem:[#allocation2 + $0x9b0] sm:$0xff] }
 0x108   :  { %1094 = vmatprep.subr.mxu1 %v324_v23  ;;  %1024 = vmatpush2.msra.mxu0 %v195_v24  ;;  %v416_v59 = vld [vmem:[#allocation2 + $0x998] sm:$0xff]  ;;  %v415_v60 = vld [vmem:[#allocation2 + $0x990] sm:$0xff] }
 0x109   :  { %1095 = vmatpush2.msra.mxu1 %v323_v25  ;;  %1025 = vmatprep.subr.mxu0 %v192_v27  ;;  %v543_v61 = vld [vmem:[#allocation2 + $0xd90] sm:$0xff]  ;;  %v540_v63 = vld [vmem:[#allocation2 + $0xd78] sm:$0xff] }
 0x10a   :  { %1096 = vmatprep.subr.mxu1 %v320_v28  ;;  %1026 = vmatpush2.msra.mxu0 %v191_v29  ;;  %v411_v0 = vld [vmem:[#allocation2 + $0x970] sm:$0xff]  ;;  %v408_v2 = vld [vmem:[#allocation2 + $0x958] sm:$0xff] }
 0x10b   :  { %1097 = vmatpush2.msra.mxu1 %v319_v30  ;;  %1027 = vmatprep.subr.mxu0 %v188_v31  ;;  %v539_v1 = vld [vmem:[#allocation2 + $0xd70] sm:$0xff]  ;;  %v536_v4 = vld [vmem:[#allocation2 + $0xd58] sm:$0xff] }
 0x10c   :  { %1098 = vmatprep.subr.mxu1 %v316_v32  ;;  %1028 = vmatpush2.msra.mxu0 %v187_v33  ;;  %v407_v5 = vld [vmem:[#allocation2 + $0x950] sm:$0xff]  ;;  %v404_v7 = vld [vmem:[#allocation2 + $0x938] sm:$0xff] }
 0x10d   :  { %1099 = vmatpush2.msra.mxu1 %v315_v34  ;;  %1029 = vmatprep.subr.mxu0 %v184_v35  ;;  %v535_v6 = vld [vmem:[#allocation2 + $0xd50] sm:$0xff]  ;;  %v532_v9 = vld [vmem:[#allocation2 + $0xd38] sm:$0xff] }
 0x10e   :  { %1100 = vmatprep.subr.mxu1 %v312_v36  ;;  %1030 = vmatpush2.msra.mxu0 %v183_v37  ;;  %v403_v10 = vld [vmem:[#allocation2 + $0x930] sm:$0xff]  ;;  %v400_v13 = vld [vmem:[#allocation2 + $0x918] sm:$0xff] }
 0x10f   :  { %1101 = vmatpush2.msra.mxu1 %v311_v38  ;;  %1031 = vmatprep.subr.mxu0 %v180_v39  ;;  %v531_v12 = vld [vmem:[#allocation2 + $0xd30] sm:$0xff]  ;;  %v528_v14 = vld [vmem:[#allocation2 + $0xd18] sm:$0xff] }
 0x110   :  { %1102 = vmatprep.subr.mxu1 %v308_v40  ;;  %1032 = vmatpush2.msra.mxu0 %v179_v42  ;;  %v399_v15 = vld [vmem:[#allocation2 + $0x910] sm:$0xff]  ;;  %v396_v18 = vld [vmem:[#allocation2 + $0x8f8] sm:$0xff] }
 0x111   :  { %1103 = vmatpush2.msra.mxu1 %v307_v43  ;;  %1033 = vmatprep.subr.mxu0 %v176_v44  ;;  %v527_v17 = vld [vmem:[#allocation2 + $0xd10] sm:$0xff]  ;;  %v524_v19 = vld [vmem:[#allocation2 + $0xcf8] sm:$0xff] }
 0x112   :  { %1104 = vmatprep.subr.mxu1 %v304_v45  ;;  %1034 = vmatpush2.msra.mxu0 %v175_v46  ;;  %v395_v20 = vld [vmem:[#allocation2 + $0x8f0] sm:$0xff]  ;;  %v392_v23 = vld [vmem:[#allocation2 + $0x8d8] sm:$0xff] }
 0x113   :  { %1035 = vmatprep.mubr.f32.mxu0 %v2048_v8  ;;  %1105 = vmatpush2.msra.mxu1 %v303_v47  ;;  %v548_v8 = vld [vmem:[#allocation2 + $0xdb8] sm:$0xff]  ;;  %v523_v22 = vld [vmem:[#allocation2 + $0xcf0] sm:$0xff] }
 0x114   :  { %1036 = vmatmul.mubr.f32.vlgmr.msra.gmra.mxu0 %v2041_v62  ;;  %1106 = vmatprep.mubr.f32.mxu1 %v2052_v11  ;;  %v547_v62 = vld [vmem:[#allocation2 + $0xdb0] sm:$0xff]  ;;  %v544_v11 = vld [vmem:[#allocation2 + $0xd98] sm:$0xff] }
 0x115   :  { %1113 = vmatprep.subr.mxu0 %v428_v48  ;;  %1184 = vmatprep.subr.mxu1 %v556_v49  ;;  %v520_v24 = vld [vmem:[#allocation2 + $0xcd8] sm:$0xff]  ;;  %v391_v25 = vld [vmem:[#allocation2 + $0x8d0] sm:$0xff] }
 0x116   :  { %1107 = vmatmul.mubr.f32.vlgmr.msra.gmra.mxu1 %v2044_v3  ;;  %1114 = vmatpush1.msra.mxu0 %v427_v50  ;;  %v412_v3 = vld [vmem:[#allocation2 + $0x978] sm:$0xff]  ;;  %v519_v27 = vld [vmem:[#allocation2 + $0xcd0] sm:$0xff] }
 0x117   :  { %1185 = vmatpush1.msra.mxu1 %v555_v51  ;;  %1115 = vmatprep.subr.mxu0 %v424_v53  ;;  %v388_v28 = vld [vmem:[#allocation2 + $0x8b8] sm:$0xff]  ;;  %v387_v30 = vld [vmem:[#allocation2 + $0x8b0] sm:$0xff] }
 0x118   :  { %1186 = vmatprep.subr.mxu1 %v552_v54  ;;  %1116 = vmatpush1.msra.mxu0 %v423_v55  ;;  %v516_v29 = vld [vmem:[#allocation2 + $0xcb8] sm:$0xff]  ;;  %v515_v31 = vld [vmem:[#allocation2 + $0xcb0] sm:$0xff] }
 0x119   :  { %1187 = vmatpush1.msra.mxu1 %v551_v56  ;;  %1117 = vmatprep.subr.mxu0 %v420_v57  ;;  %v384_v32 = vld [vmem:[#allocation2 + $0x898] sm:$0xff]  ;;  %v383_v34 = vld [vmem:[#allocation2 + $0x890] sm:$0xff] }
 0x11a   :  { %1188 = vmatprep.subr.mxu1 %v548_v8  ;;  %1118 = vmatpush1.msra.mxu0 %v419_v58  ;;  %v512_v33 = vld [vmem:[#allocation2 + $0xc98] sm:$0xff]  ;;  %v511_v35 = vld [vmem:[#allocation2 + $0xc90] sm:$0xff] }
 0x11b   :  { %1189 = vmatpush1.msra.mxu1 %v547_v62  ;;  %1119 = vmatprep.subr.mxu0 %v416_v59  ;;  %v380_v36 = vld [vmem:[#allocation2 + $0x878] sm:$0xff]  ;;  %v379_v38 = vld [vmem:[#allocation2 + $0x870] sm:$0xff] }
 0x11c   :  { %1190 = vmatprep.subr.mxu1 %v544_v11  ;;  %1120 = vmatpush1.msra.mxu0 %v415_v60  ;;  %v508_v37 = vld [vmem:[#allocation2 + $0xc78] sm:$0xff]  ;;  %v507_v39 = vld [vmem:[#allocation2 + $0xc70] sm:$0xff] }
 0x11d   :  { %1191 = vmatpush1.msra.mxu1 %v543_v61  ;;  %1121 = vmatprep.subr.mxu0 %v412_v3  ;;  %v376_v40 = vld [vmem:[#allocation2 + $0x858] sm:$0xff]  ;;  %v375_v43 = vld [vmem:[#allocation2 + $0x850] sm:$0xff] }
 0x11e   :  { %1192 = vmatprep.subr.mxu1 %v540_v63  ;;  %1122 = vmatpush1.msra.mxu0 %v411_v0  ;;  %v504_v42 = vld [vmem:[#allocation2 + $0xc58] sm:$0xff]  ;;  %v503_v44 = vld [vmem:[#allocation2 + $0xc50] sm:$0xff] }
 0x11f   :  { %1193 = vmatpush1.msra.mxu1 %v539_v1  ;;  %1123 = vmatprep.subr.mxu0 %v408_v2  ;;  %v372_v45 = vld [vmem:[#allocation2 + $0x838] sm:$0xff]  ;;  %v371_v47 = vld [vmem:[#allocation2 + $0x830] sm:$0xff] }
 0x120   :  { %1194 = vmatprep.subr.mxu1 %v536_v4  ;;  %1124 = vmatpush1.msra.mxu0 %v407_v5  ;;  %v500_v46 = vld [vmem:[#allocation2 + $0xc38] sm:$0xff]  ;;  %v499_v48 = vld [vmem:[#allocation2 + $0xc30] sm:$0xff] }
 0x121   :  { %1195 = vmatpush1.msra.mxu1 %v535_v6  ;;  %1125 = vmatprep.subr.mxu0 %v404_v7  ;;  %v368_v49 = vld [vmem:[#allocation2 + $0x818] sm:$0xff]  ;;  %v367_v51 = vld [vmem:[#allocation2 + $0x810] sm:$0xff] }
 0x122   :  { %1196 = vmatprep.subr.mxu1 %v532_v9  ;;  %1126 = vmatpush1.msra.mxu0 %v403_v10  ;;  %v496_v50 = vld [vmem:[#allocation2 + $0xc18] sm:$0xff]  ;;  %v495_v53 = vld [vmem:[#allocation2 + $0xc10] sm:$0xff] }
 0x123   :  { %1197 = vmatpush1.msra.mxu1 %v531_v12  ;;  %1127 = vmatprep.subr.mxu0 %v400_v13  ;;  %v492_v54 = vld [vmem:[#allocation2 + $0xbf8] sm:$0xff]  ;;  %v491_v56 = vld [vmem:[#allocation2 + $0xbf0] sm:$0xff] }
 0x124   :  { %1198 = vmatprep.subr.mxu1 %v528_v14  ;;  %1128 = vmatpush1.msra.mxu0 %v399_v15  ;;  %v620_v55 = vld [vmem:[#allocation2 + $0xff8] sm:$0xff]  ;;  %v619_v57 = vld [vmem:[#allocation2 + $0xff0] sm:$0xff] }
 0x125   :  { %1199 = vmatpush1.msra.mxu1 %v527_v17  ;;  %1129 = vmatprep.subr.mxu0 %v396_v18  ;;  %v488_v8 = vld [vmem:[#allocation2 + $0xbd8] sm:$0xff]  ;;  %v487_v62 = vld [vmem:[#allocation2 + $0xbd0] sm:$0xff] }
 0x126   :  { %1200 = vmatprep.subr.mxu1 %v524_v19  ;;  %1130 = vmatpush1.msra.mxu0 %v395_v20  ;;  %v616_v58 = vld [vmem:[#allocation2 + $0xfd8] sm:$0xff]  ;;  %v615_v59 = vld [vmem:[#allocation2 + $0xfd0] sm:$0xff] }
 0x127   :  { %1201 = vmatpush1.msra.mxu1 %v523_v22  ;;  %1131 = vmatprep.subr.mxu0 %v392_v23  ;;  %v484_v11 = vld [vmem:[#allocation2 + $0xbb8] sm:$0xff]  ;;  %v483_v61 = vld [vmem:[#allocation2 + $0xbb0] sm:$0xff] }
 0x128   :  { %1202 = vmatprep.subr.mxu1 %v520_v24  ;;  %1132 = vmatpush1.msra.mxu0 %v391_v25  ;;  %v612_v60 = vld [vmem:[#allocation2 + $0xfb8] sm:$0xff]  ;;  %v611_v3 = vld [vmem:[#allocation2 + $0xfb0] sm:$0xff] }
 0x129   :  { %1203 = vmatpush1.msra.mxu1 %v519_v27  ;;  %1133 = vmatprep.subr.mxu0 %v388_v28  ;;  %v480_v63 = vld [vmem:[#allocation2 + $0xb98] sm:$0xff]  ;;  %v479_v1 = vld [vmem:[#allocation2 + $0xb90] sm:$0xff] }
 0x12a   :  { %1204 = vmatprep.subr.mxu1 %v516_v29  ;;  %1134 = vmatpush1.msra.mxu0 %v387_v30  ;;  %v608_v0 = vld [vmem:[#allocation2 + $0xf98] sm:$0xff]  ;;  %v607_v2 = vld [vmem:[#allocation2 + $0xf90] sm:$0xff] }
 0x12b   :  { %1205 = vmatpush1.msra.mxu1 %v515_v31  ;;  %1135 = vmatprep.subr.mxu0 %v384_v32  ;;  %v476_v4 = vld [vmem:[#allocation2 + $0xb78] sm:$0xff]  ;;  %v475_v6 = vld [vmem:[#allocation2 + $0xb70] sm:$0xff] }
 0x12c   :  { %1206 = vmatprep.subr.mxu1 %v512_v33  ;;  %1136 = vmatpush1.msra.mxu0 %v383_v34  ;;  %v604_v5 = vld [vmem:[#allocation2 + $0xf78] sm:$0xff]  ;;  %v603_v7 = vld [vmem:[#allocation2 + $0xf70] sm:$0xff] }
 0x12d   :  { %1207 = vmatpush1.msra.mxu1 %v511_v35  ;;  %1137 = vmatprep.subr.mxu0 %v380_v36  ;;  %v472_v9 = vld [vmem:[#allocation2 + $0xb58] sm:$0xff]  ;;  %v471_v12 = vld [vmem:[#allocation2 + $0xb50] sm:$0xff] }
 0x12e   :  { %1208 = vmatprep.subr.mxu1 %v508_v37  ;;  %1138 = vmatpush1.msra.mxu0 %v379_v38  ;;  %v600_v10 = vld [vmem:[#allocation2 + $0xf58] sm:$0xff]  ;;  %v599_v13 = vld [vmem:[#allocation2 + $0xf50] sm:$0xff] }
 0x12f   :  { %1209 = vmatpush1.msra.mxu1 %v507_v39  ;;  %1139 = vmatprep.subr.mxu0 %v376_v40  ;;  %v468_v14 = vld [vmem:[#allocation2 + $0xb38] sm:$0xff]  ;;  %v467_v17 = vld [vmem:[#allocation2 + $0xb30] sm:$0xff] }
 0x130   :  { %1210 = vmatprep.subr.mxu1 %v504_v42  ;;  %1140 = vmatpush1.msra.mxu0 %v375_v43  ;;  %v596_v15 = vld [vmem:[#allocation2 + $0xf38] sm:$0xff]  ;;  %v595_v18 = vld [vmem:[#allocation2 + $0xf30] sm:$0xff] }
 0x131   :  { %1211 = vmatpush1.msra.mxu1 %v503_v44  ;;  %1141 = vmatprep.subr.mxu0 %v372_v45  ;;  %v464_v19 = vld [vmem:[#allocation2 + $0xb18] sm:$0xff]  ;;  %v463_v22 = vld [vmem:[#allocation2 + $0xb10] sm:$0xff] }
 0x132   :  { %1212 = vmatprep.subr.mxu1 %v500_v46  ;;  %1142 = vmatpush1.msra.mxu0 %v371_v47  ;;  %v592_v20 = vld [vmem:[#allocation2 + $0xf18] sm:$0xff]  ;;  %v591_v23 = vld [vmem:[#allocation2 + $0xf10] sm:$0xff] }
 0x133   :  { %1213 = vmatpush1.msra.mxu1 %v499_v48  ;;  %1143 = vmatprep.subr.mxu0 %v368_v49  ;;  %v460_v24 = vld [vmem:[#allocation2 + $0xaf8] sm:$0xff]  ;;  %v459_v27 = vld [vmem:[#allocation2 + $0xaf0] sm:$0xff] }
 0x134   :  { %1214 = vmatprep.subr.mxu1 %v496_v50  ;;  %1144 = vmatpush1.msra.mxu0 %v367_v51  ;;  %v588_v25 = vld [vmem:[#allocation2 + $0xef8] sm:$0xff]  ;;  %v587_v28 = vld [vmem:[#allocation2 + $0xef0] sm:$0xff] }
 0x135   :  { %1215 = vmatpush1.msra.mxu1 %v495_v53  ;;  %1145 = vmatprep.subr.mxu0 %v492_v54  ;;  %v456_v29 = vld [vmem:[#allocation2 + $0xad8] sm:$0xff]  ;;  %v455_v31 = vld [vmem:[#allocation2 + $0xad0] sm:$0xff] }
 0x136   :  { %1216 = vmatprep.subr.mxu1 %v620_v55  ;;  %1146 = vmatpush2.msra.mxu0 %v491_v56  ;;  %v584_v30 = vld [vmem:[#allocation2 + $0xed8] sm:$0xff]  ;;  %v583_v32 = vld [vmem:[#allocation2 + $0xed0] sm:$0xff] }
 0x137   :  { %1217 = vmatpush2.msra.mxu1 %v619_v57  ;;  %1147 = vmatprep.subr.mxu0 %v488_v8  ;;  %v452_v33 = vld [vmem:[#allocation2 + $0xab8] sm:$0xff]  ;;  %v451_v35 = vld [vmem:[#allocation2 + $0xab0] sm:$0xff] }
 0x138   :  { %1218 = vmatprep.subr.mxu1 %v616_v58  ;;  %1148 = vmatpush2.msra.mxu0 %v487_v62  ;;  %v580_v34 = vld [vmem:[#allocation2 + $0xeb8] sm:$0xff]  ;;  %v579_v36 = vld [vmem:[#allocation2 + $0xeb0] sm:$0xff] }
 0x139   :  { %1219 = vmatpush2.msra.mxu1 %v615_v59  ;;  %1149 = vmatprep.subr.mxu0 %v484_v11  ;;  %v448_v37 = vld [vmem:[#allocation2 + $0xa98] sm:$0xff]  ;;  %v447_v39 = vld [vmem:[#allocation2 + $0xa90] sm:$0xff] }
 0x13a   :  { %1220 = vmatprep.subr.mxu1 %v612_v60  ;;  %1150 = vmatpush2.msra.mxu0 %v483_v61  ;;  %v576_v38 = vld [vmem:[#allocation2 + $0xe98] sm:$0xff]  ;;  %v575_v40 = vld [vmem:[#allocation2 + $0xe90] sm:$0xff]  ;;  %v1272_v60 = vld [vmem:[%s2327_s3 + $0x68] sm:$0xff] }
 0x13b   :  { %1221 = vmatpush2.msra.mxu1 %v611_v3  ;;  %1151 = vmatprep.subr.mxu0 %v480_v63  ;;  %v444_v42 = vld [vmem:[#allocation2 + $0xa78] sm:$0xff]  ;;  %v443_v44 = vld [vmem:[#allocation2 + $0xa70] sm:$0xff]  ;;  %v1287_v3 = vld [vmem:[%s2327_s3 + $0xe0] sm:$0xff] }
 0x13c   :  { %1222 = vmatprep.subr.mxu1 %v608_v0  ;;  %1152 = vmatpush2.msra.mxu0 %v479_v1  ;;  %v572_v43 = vld [vmem:[#allocation2 + $0xe78] sm:$0xff]  ;;  %v571_v45 = vld [vmem:[#allocation2 + $0xe70] sm:$0xff]  ;;  %v1320_v63 = vld [vmem:[%s2327_s3 + $0x1e8] sm:$0xff] }
 0x13d   :  { %1223 = vmatpush2.msra.mxu1 %v607_v2  ;;  %1153 = vmatprep.subr.mxu0 %v476_v4  ;;  %v440_v46 = vld [vmem:[#allocation2 + $0xa58] sm:$0xff]  ;;  %v439_v48 = vld [vmem:[#allocation2 + $0xa50] sm:$0xff]  ;;  %v1271_v0 = vld [vmem:[%s2327_s3 + $0x60] sm:$0xff] }
 0x13e   :  { %1224 = vmatprep.subr.mxu1 %v604_v5  ;;  %1154 = vmatpush2.msra.mxu0 %v475_v6  ;;  %v568_v47 = vld [vmem:[#allocation2 + $0xe58] sm:$0xff]  ;;  %v567_v49 = vld [vmem:[#allocation2 + $0xe50] sm:$0xff]  ;;  %v1304_v1 = vld [vmem:[%s2327_s3 + $0x168] sm:$0xff] }
 0x13f   :  { %1225 = vmatpush2.msra.mxu1 %v603_v7  ;;  %1155 = vmatprep.subr.mxu0 %v472_v9  ;;  %v436_v50 = vld [vmem:[#allocation2 + $0xa38] sm:$0xff]  ;;  %v435_v53 = vld [vmem:[#allocation2 + $0xa30] sm:$0xff]  ;;  %v1319_v4 = vld [vmem:[%s2327_s3 + $0x1e0] sm:$0xff] }
 0x140   :  { %1226 = vmatprep.subr.mxu1 %v600_v10  ;;  %1156 = vmatpush2.msra.mxu0 %v471_v12  ;;  %v564_v51 = vld [vmem:[#allocation2 + $0xe38] sm:$0xff]  ;;  %v563_v54 = vld [vmem:[#allocation2 + $0xe30] sm:$0xff]  ;;  %v1303_v6 = vld [vmem:[%s2327_s3 + $0x160] sm:$0xff] }
 0x141   :  { %1227 = vmatpush2.msra.mxu1 %v599_v13  ;;  %1157 = vmatprep.subr.mxu0 %v468_v14  ;;  %v432_v55 = vld [vmem:[#allocation2 + $0xa18] sm:$0xff]  ;;  %v431_v57 = vld [vmem:[#allocation2 + $0xa10] sm:$0xff]  ;;  %v1284_v13 = vld [vmem:[%s2327_s3 + $0xc8] sm:$0xff] }
 0x142   :  { %1228 = vmatprep.subr.mxu1 %v596_v15  ;;  %1158 = vmatpush2.msra.mxu0 %v467_v17  ;;  %v560_v56 = vld [vmem:[#allocation2 + $0xe18] sm:$0xff]  ;;  %v559_v8 = vld [vmem:[#allocation2 + $0xe10] sm:$0xff]  ;;  %v1268_v15 = vld [vmem:[%s2327_s3 + $0x48] sm:$0xff] }
 0x143   :  { %1229 = vmatpush2.msra.mxu1 %v595_v18  ;;  %1159 = vmatprep.subr.mxu0 %v464_v19  ;;  %v1290_v58 = vld [vmem:[%s2327_s3 + $0xf8] sm:$0xff]  ;;  %v1289_v59 = vld [vmem:[%s2327_s3 + $0xf0] sm:$0xff]  ;;  %v1283_v18 = vld [vmem:[%s2327_s3 + $0xc0] sm:$0xff] }
 0x144   :  { %1230 = vmatprep.subr.mxu1 %v592_v20  ;;  %1160 = vmatpush2.msra.mxu0 %v463_v22  ;;  %v1274_v62 = vld [vmem:[%s2327_s3 + $0x78] sm:$0xff]  ;;  %v1321_v11 = vld [vmem:[%s2327_s3 + $0x1f0] sm:$0xff]  ;;  %v1316_v19 = vld [vmem:[%s2327_s3 + $0x1c8] sm:$0xff] }
 0x145   :  { %1231 = vmatpush2.msra.mxu1 %v591_v23  ;;  %1161 = vmatprep.subr.mxu0 %v460_v24  ;;  %v1305_v61 = vld [vmem:[%s2327_s3 + $0x170] sm:$0xff]  ;;  %v1286_v2 = vld [vmem:[%s2327_s3 + $0xd8] sm:$0xff]  ;;  %v1267_v20 = vld [vmem:[%s2327_s3 + $0x40] sm:$0xff] }
 0x146   :  { %1232 = vmatprep.subr.mxu1 %v588_v25  ;;  %1162 = vmatpush2.msra.mxu0 %v459_v27  ;;  %v1270_v5 = vld [vmem:[%s2327_s3 + $0x58] sm:$0xff]  ;;  %v1285_v7 = vld [vmem:[%s2327_s3 + $0xd0] sm:$0xff]  ;;  %v1300_v22 = vld [vmem:[%s2327_s3 + $0x148] sm:$0xff] }
 0x147   :  { %1233 = vmatpush2.msra.mxu1 %v587_v28  ;;  %1163 = vmatprep.subr.mxu0 %v456_v29  ;;  %v1318_v9 = vld [vmem:[%s2327_s3 + $0x1d8] sm:$0xff]  ;;  %v1269_v10 = vld [vmem:[%s2327_s3 + $0x50] sm:$0xff]  ;;  %v1315_v24 = vld [vmem:[%s2327_s3 + $0x1c0] sm:$0xff] }
 0x148   :  { %1234 = vmatprep.subr.mxu1 %v584_v30  ;;  %1164 = vmatpush2.msra.mxu0 %v455_v31  ;;  %v1302_v12 = vld [vmem:[%s2327_s3 + $0x158] sm:$0xff]  ;;  %v1317_v14 = vld [vmem:[%s2327_s3 + $0x1d0] sm:$0xff]  ;;  %v1299_v27 = vld [vmem:[%s2327_s3 + $0x140] sm:$0xff] }
 0x149   :  { %1235 = vmatpush2.msra.mxu1 %v583_v32  ;;  %1165 = vmatprep.subr.mxu0 %v452_v33  ;;  %v1301_v17 = vld [vmem:[%s2327_s3 + $0x150] sm:$0xff]  ;;  %v1282_v23 = vld [vmem:[%s2327_s3 + $0xb8] sm:$0xff]  ;;  %v1280_v32 = vld [vmem:[%s2327_s3 + $0xa8] sm:$0xff] }
 0x14a   :  { %1236 = vmatprep.subr.mxu1 %v580_v34  ;;  %1166 = vmatpush2.msra.mxu0 %v451_v35  ;;  %v1266_v25 = vld [vmem:[%s2327_s3 + $0x38] sm:$0xff]  ;;  %v1281_v28 = vld [vmem:[%s2327_s3 + $0xb0] sm:$0xff]  ;;  %v1264_v34 = vld [vmem:[%s2327_s3 + $0x28] sm:$0xff] }
 0x14b   :  { %1237 = vmatpush2.msra.mxu1 %v579_v36  ;;  %1167 = vmatprep.subr.mxu0 %v448_v37  ;;  %v1314_v29 = vld [vmem:[%s2327_s3 + $0x1b8] sm:$0xff]  ;;  %v1265_v30 = vld [vmem:[%s2327_s3 + $0x30] sm:$0xff]  ;;  %v1279_v36 = vld [vmem:[%s2327_s3 + $0xa0] sm:$0xff] }
 0x14c   :  { %1238 = vmatprep.subr.mxu1 %v576_v38  ;;  %1168 = vmatpush2.msra.mxu0 %v447_v39  ;;  %v1298_v31 = vld [vmem:[%s2327_s3 + $0x138] sm:$0xff]  ;;  %v1313_v33 = vld [vmem:[%s2327_s3 + $0x1b0] sm:$0xff]  ;;  %v1312_v37 = vld [vmem:[%s2327_s3 + $0x1a8] sm:$0xff] }
 0x14d   :  { %1239 = vmatpush2.msra.mxu1 %v575_v40  ;;  %1169 = vmatprep.subr.mxu0 %v444_v42  ;;  %v1297_v35 = vld [vmem:[%s2327_s3 + $0x130] sm:$0xff]  ;;  %v1263_v38 = vld [vmem:[%s2327_s3 + $0x20] sm:$0xff]  ;;  %v1296_v39 = vld [vmem:[%s2327_s3 + $0x128] sm:$0xff] }
 0x14e   :  { %1240 = vmatprep.subr.mxu1 %v572_v43  ;;  %1170 = vmatpush2.msra.mxu0 %v443_v44  ;;  %v1278_v40 = vld [vmem:[%s2327_s3 + $0x98] sm:$0xff]  ;;  %v1277_v43 = vld [vmem:[%s2327_s3 + $0x90] sm:$0xff] }
 0x14f   :  { %1241 = vmatpush2.msra.mxu1 %v571_v45  ;;  %1171 = vmatprep.subr.mxu0 %v440_v46  ;;  %v1262_v42 = vld [vmem:[%s2327_s3 + $0x18] sm:$0xff]  ;;  %v1261_v44 = vld [vmem:[%s2327_s3 + $0x10] sm:$0xff]  ;;  %v1276_v45 = vld [vmem:[%s2327_s3 + $0x88] sm:$0xff] }
 0x150   :  { %1242 = vmatprep.subr.mxu1 %v568_v47  ;;  %1172 = vmatpush2.msra.mxu0 %v439_v48  ;;  %v1260_v46 = vld [vmem:[%s2327_s3 + $0x8] sm:$0xff]  ;;  %v1275_v47 = vld [vmem:[%s2327_s3 + $0x80] sm:$0xff] }
 0x151   :  { %1243 = vmatpush2.msra.mxu1 %v567_v49  ;;  %1173 = vmatprep.subr.mxu0 %v436_v50  ;;  %v1259_v48 = vld [vmem:[%s2327_s3] sm:$0xff]  ;;  %v625_v49 = vsub.s32 0, %v2032_v41 }
 0x152   :  { %1244 = vmatprep.subr.mxu1 %v564_v51  ;;  %1174 = vmatpush2.msra.mxu0 %v435_v53  ;;  %v621_v50 = vld [vmem:[#allocation5] sm:$0xf]  ;;  %v629_v51 = vsub.s32 1, %v2032_v41  ;;  %v753_v53 = vpop.f32.mrf.mxu0 }
 0x153   :  { %1245 = vmatpush2.msra.mxu1 %v563_v54  ;;  %1175 = vmatprep.subr.mxu0 %v432_v55  ;;  %v626_v54 = vrot.slane %v621_v50, %v625_v49  ;;  %v1564_v49 = vld [vmem:[#allocation10 + $0x18] sm:$0xff] }
 0x154   :  { %1246 = vmatprep.subr.mxu1 %v560_v56  ;;  %1176 = vmatpush2.msra.mxu0 %v431_v57  ;;  %v630_v55 = vrot.slane %v621_v50, %v629_v51  ;;  %v824_v56 = vpop.f32.mrf.mxu1  ;;  %v755_v57 = vpop.f32.mrf.mxu0 }
 0x155   :  { %1177 = vmatprep.mubr.f32.mxu0 %v2069_v26  ;;  %1247 = vmatpush2.msra.mxu1 %v559_v8  ;;  %v1273_v26 = vld [vmem:[%s2327_s3 + $0x70] sm:$0xff]  ;;  %v754_v8 = vadd.f32 %v753_v53, %v626_v54  ;;  %v1665_v54 = vld [vmem:[#allocation7] ss:$0 sm:$0xff] }
 0x156   :  { %1248 = vmatprep.mubr.f32.mxu1 %v2073_v52  ;;  %1178 = vmatmul.mubr.f32.vlgmr.msra.gmra.mxu0 %v2062_v16  ;;  %v1288_v52 = vld [vmem:[%s2327_s3 + $0xe8] sm:$0xff]  ;;  %v1322_v16 = vld [vmem:[%s2327_s3 + $0x1f8] sm:$0xff] }
 0x157   :  { %1249 = vmatmul.mubr.f32.vlgmr.msra.gmra.mxu1 %v2065_v21  ;;  %1670 = vmatprep.subr.mxu0 %v1290_v58  ;;  %v1306_v21 = vld [vmem:[%s2327_s3 + $0x178] sm:$0xff]  ;;  %v756_v58 = vadd.f32 %v755_v57, %v630_v55 }
 0x158   :  { %1671 = vmatpush3.msra.mxu0 %v1274_v62  ;;  %1705 = vmatprep.subr.mxu1 %v1322_v16  ;;  %v826_v62 = vpop.f32.mrf.mxu1 }
 0x159   :  { %1672 = vmatprep.subr.mxu0 %v1289_v59  ;;  %1706 = vmatpush3.msra.mxu1 %v1306_v21  ;;  %v825_v59 = vadd.f32 %v824_v56, %v754_v8 }
 0x15a   :  { %1673 = vmatpush3.msra.mxu0 %v1273_v26  ;;  %1707 = vmatprep.subr.mxu1 %v1321_v11 }
 0x15b   :  { %1674 = vmatprep.subr.mxu0 %v1288_v52  ;;  %1708 = vmatpush3.msra.mxu1 %v1305_v61  ;;  %v827_v52 = vadd.f32 %v826_v62, %v756_v58 }
 0x15c   :  { %1675 = vmatpush3.msra.mxu0 %v1272_v60  ;;  %1709 = vmatprep.subr.mxu1 %v1320_v63  ;;  %v1311_v63 = vld [vmem:[%s2327_s3 + $0x1a0] sm:$0xff] }
 0x15d   :  { %1676 = vmatprep.subr.mxu0 %v1287_v3  ;;  %1710 = vmatpush3.msra.mxu1 %v1304_v1  ;;  %v1295_v1 = vld [vmem:[%s2327_s3 + $0x120] sm:$0xff] }
 0x15e   :  { %1677 = vmatpush3.msra.mxu0 %v1271_v0  ;;  %1711 = vmatprep.subr.mxu1 %v1319_v4 }
 0x15f   :  { %1678 = vmatprep.subr.mxu0 %v1286_v2  ;;  %1712 = vmatpush3.msra.mxu1 %v1303_v6  ;;  %v1310_v2 = vld [vmem:[%s2327_s3 + $0x198] sm:$0xff] }
 0x160   :  { %1679 = vmatpush3.msra.mxu0 %v1270_v5  ;;  %1713 = vmatprep.subr.mxu1 %v1318_v9  ;;  %v1294_v5 = vld [vmem:[%s2327_s3 + $0x118] sm:$0xff]  ;;  %v1293_v9 = vld [vmem:[%s2327_s3 + $0x110] sm:$0xff] }
 0x161   :  { %1680 = vmatprep.subr.mxu0 %v1285_v7  ;;  %1714 = vmatpush3.msra.mxu1 %v1302_v12  ;;  %v1309_v7 = vld [vmem:[%s2327_s3 + $0x190] sm:$0xff]  ;;  %v1292_v12 = vld [vmem:[%s2327_s3 + $0x108] sm:$0xff] }
 0x162   :  { %1681 = vmatpush3.msra.mxu0 %v1269_v10  ;;  %1715 = vmatprep.subr.mxu1 %v1317_v14  ;;  %v1308_v10 = vld [vmem:[%s2327_s3 + $0x188] sm:$0xff]  ;;  %v1291_v14 = vld [vmem:[%s2327_s3 + $0x100] sm:$0xff] }
 0x163   :  { %1682 = vmatprep.subr.mxu0 %v1284_v13  ;;  %1716 = vmatpush3.msra.mxu1 %v1301_v17  ;;  %v1307_v13 = vld [vmem:[%s2327_s3 + $0x180] sm:$0xff]  ;;  %v1961_v17 = vmov 0.0  }
 0x164   :  { %1683 = vmatpush3.msra.mxu0 %v1268_v15  ;;  %1717 = vmatprep.subr.mxu1 %v1316_v19  ;;  %v1478_v15 = vld [vmem:[%s2329_s5 + $0x38] sm:$0xff]  ;;  %v1476_v19 = vld [vmem:[%s2329_s5 + $0x28] sm:$0xff] }
 0x165   :  { %1684 = vmatprep.subr.mxu0 %v1283_v18  ;;  %1718 = vmatpush3.msra.mxu1 %v1300_v22  ;;  %v1477_v18 = vld [vmem:[%s2329_s5 + $0x30] sm:$0xff]  ;;  %v637_v22 = vsub.s32 3, %v2032_v41 }
 0x166   :  { %1685 = vmatpush3.msra.mxu0 %v1267_v20  ;;  %1719 = vmatprep.subr.mxu1 %v1315_v24  ;;  %v633_v20 = vsub.s32 2, %v2032_v41 }
 0x167   :  { %1686 = vmatprep.subr.mxu0 %v1282_v23  ;;  %1720 = vmatpush3.msra.mxu1 %v1299_v27 }
 0x168   :  { %1687 = vmatpush3.msra.mxu0 %v1266_v25  ;;  %1721 = vmatprep.subr.mxu1 %v1314_v29  ;;  %v634_v24 = vrot.slane %v621_v50, %v633_v20  ;;  %v638_v25 = vrot.slane %v621_v50, %v637_v22 }
 0x169   :  { %1688 = vmatprep.subr.mxu0 %v1281_v28  ;;  %1722 = vmatpush3.msra.mxu1 %v1298_v31 }
 0x16a   :  { %1689 = vmatpush3.msra.mxu0 %v1265_v30  ;;  %1723 = vmatprep.subr.mxu1 %v1313_v33 }
 0x16b   :  { %1690 = vmatprep.subr.mxu0 %v1280_v32  ;;  %1724 = vmatpush3.msra.mxu1 %v1297_v35 }
 0x16c   :  { %1691 = vmatpush3.msra.mxu0 %v1264_v34  ;;  %1725 = vmatprep.subr.mxu1 %v1312_v37 }
 0x16d   :  { %1692 = vmatprep.subr.mxu0 %v1279_v36  ;;  %1726 = vmatpush3.msra.mxu1 %v1296_v39 }
 0x16e   :  { %1693 = vmatpush3.msra.mxu0 %v1263_v38  ;;  %1727 = vmatprep.subr.mxu1 %v1311_v63 }
 0x16f   :  { %1694 = vmatprep.subr.mxu0 %v1278_v40  ;;  %1728 = vmatpush3.msra.mxu1 %v1295_v1 }
 0x170   :  { %1695 = vmatpush3.msra.mxu0 %v1262_v42  ;;  %1729 = vmatprep.subr.mxu1 %v1310_v2 }
 0x171   :  { %1696 = vmatprep.subr.mxu0 %v1277_v43  ;;  %1730 = vmatpush3.msra.mxu1 %v1294_v5 }
 0x172   :  { %1697 = vmatpush3.msra.mxu0 %v1261_v44  ;;  %1731 = vmatprep.subr.mxu1 %v1309_v7  ;;  %v1475_v44 = vld [vmem:[%s2329_s5 + $0x20] sm:$0xff] }
 0x173   :  { %1698 = vmatprep.subr.mxu0 %v1276_v45  ;;  %1732 = vmatpush3.msra.mxu1 %v1293_v9  ;;  %v1474_v45 = vld [vmem:[%s2329_s5 + $0x18] sm:$0xff] }
 0x174   :  { %1699 = vmatpush3.msra.mxu0 %v1260_v46  ;;  %1733 = vmatprep.subr.mxu1 %v1308_v10  ;;  %v1473_v46 = vld [vmem:[%s2329_s5 + $0x10] sm:$0xff] }
 0x175   :  { %1700 = vmatprep.subr.mxu0 %v1275_v47  ;;  %1734 = vmatpush3.msra.mxu1 %v1292_v12  ;;  %v1472_v47 = vld [vmem:[%s2329_s5 + $0x8] sm:$0xff] }
 0x176   :  { %1701 = vmatpush3.msra.mxu0 %v1259_v48  ;;  %1735 = vmatprep.subr.mxu1 %v1307_v13  ;;  %v1471_v48 = vld [vmem:[%s2329_s5] sm:$0xff]  ;;  %s1963_s5 = smov [#allocation13]  }
 0x177   :  { %1736 = vmatpush3.msra.mxu1 %v1291_v14  ;;  %1754 = vmatprep.subr.mxu0 %v1961_v17  ;;  %s1653_s24 = sshll.u32 %s1963_s5, 4  ;;  %s1654_s24 = int_to_ptr.vmem [resolvable:$true] %s1653_s24 }
 0x178   :  { %1773 = vmatprep.subr.mxu1 %v1961_v17  ;;  %s1920_s25 = scalar_lea.vmem %s1654_s24, 32  ;;  %p1925_p3 = scmp.lt.s32.totalorder %s1654_s24, %s1654_s24 }
 0x179   :  { %p1921_p2 = scmp.ne.s32.totalorder %s1654_s24, %s1920_s25  ;;  %p1926_p4 = scmp.lt.s32.totalorder %s1920_s25, %s1920_s25 }
 0x17b   :  { %p1927_p5 = por %p1926_p4, %p1925_p3 }
 0x17d   :  { %p1928_p6 = pnand %p1927_p5, %p1921_p2 }
 0x192   :  { %v895_v26 = vpop.f32.mrf.mxu0 }
 0x193   :  { %v896_v16 = vadd.f32 %v895_v26, %v825_v59  ;;  %v1563_v59 = vld [vmem:[#allocation10 + $0x10] sm:$0xff]  ;;  %v1562_v26 = vld [vmem:[#allocation10 + $0x8] sm:$0xff] }
 0x194   :  { %v966_v21 = vpop.f32.mrf.mxu1  ;;  %v897_v11 = vpop.f32.mrf.mxu0 }
 0x195   :  { %v898_v60 = vadd.f32 %v897_v11, %v827_v52  ;;  %v967_v61 = vadd.f32 %v966_v21, %v896_v16  ;;  %v1561_v52 = vld [vmem:[#allocation10] sm:$0xff]  ;;  %v1666_v16 = vld [vmem:[#allocation8] ss:$0 sm:$0xff] }
 0x196   :  { %v968_v3 = vpop.f32.mrf.mxu1 }
 0x197   :  { %v969_v0 = vadd.f32 %v968_v3, %v898_v60  ;;  %v1255_v6 = vmax.f32 %v967_v61, 0.0  ;;  %v1668_v3 = vld [vmem:[#allocation11] ss:$0 sm:$0xff] }
 0x199   :  { %v1256_v4 = vmax.f32 %v969_v0, 0.0 }
 0x19b   :  { %1394 = vmatprep.mubr.f32.mxu0 %v1256_v4 }
 0x19c   :  { %1395 = vmatmul.mubr.f32.vlgmr.msra.gmra.mxu0 %v1255_v6 }
 0x19d   :  { %1755 = vmatpush3.msra.mxu0 %v1478_v15  ;;  %1770 = vmatprep.mubr.msk.f32.mxu0 %vm1962_vm0, %v1961_v17 }
 0x19e   :  { %1756 = vmatprep.subr.mxu0 %v1961_v17 }
 0x19f   :  { %1757 = vmatpush3.msra.mxu0 %v1477_v18 }
 0x1a0   :  { %1758 = vmatprep.subr.mxu0 %v1961_v17 }
 0x1a1   :  { %1759 = vmatpush3.msra.mxu0 %v1476_v19 }
 0x1a2   :  { %1760 = vmatprep.subr.mxu0 %v1961_v17 }
 0x1a3   :  { %1761 = vmatpush3.msra.mxu0 %v1475_v44 }
 0x1a4   :  { %1762 = vmatprep.subr.mxu0 %v1961_v17 }
 0x1a5   :  { %1763 = vmatpush3.msra.mxu0 %v1474_v45 }
 0x1a6   :  { %1764 = vmatprep.subr.mxu0 %v1961_v17 }
 0x1a7   :  { %1765 = vmatpush3.msra.mxu0 %v1473_v46 }
 0x1a8   :  { %1766 = vmatprep.subr.mxu0 %v1961_v17 }
 0x1a9   :  { %1767 = vmatpush3.msra.mxu0 %v1472_v47 }
 0x1aa   :  { %1768 = vmatprep.subr.mxu0 %v1961_v17 }
 0x1ab   :  { %1769 = vmatpush3.msra.mxu0 %v1471_v48 }
 0x1d4   :  { %v1037_v23 = vpop.f32.mrf.mxu0 }
 0x1d5   :  { %v1038_v29 = vadd.f32 %v1037_v23, %v634_v24 }
 0x1d6   :  { %v1108_v27 = vpop.f32.mrf.mxu1  ;;  %v1039_v28 = vpop.f32.mrf.mxu0 }
 0x1d7   :  { %v1040_v30 = vadd.f32 %v1039_v28, %v638_v25  ;;  %v1109_v32 = vadd.f32 %v1108_v27, %v1038_v29 }
 0x1d8   :  { %v1110_v31 = vpop.f32.mrf.mxu1 }
 0x1d9   :  { %v1111_v35 = vadd.f32 %v1110_v31, %v1040_v30 }
 0x216   :  { %v1179_v33 = vpop.f32.mrf.mxu0 }
 0x217   :  { %v1250_v34 = vpop.f32.mrf.mxu1  ;;  %v1180_v36 = vadd.f32 %v1179_v33, %v1109_v32 }
 0x218   :  { %v1181_v37 = vpop.f32.mrf.mxu0 }
 0x219   :  { %v1182_v38 = vadd.f32 %v1181_v37, %v1111_v35  ;;  %v1251_v39 = vadd.f32 %v1250_v34, %v1180_v36  ;;  %v1252_v40 = vpop.f32.mrf.mxu1 }
 0x21b   :  { %v1253_v42 = vadd.f32 %v1252_v40, %v1182_v38  ;;  %v1257_v41 = vmax.f32 %v1251_v39, 0.0 }
 0x21d   :  { %v1258_v43 = vmax.f32 %v1253_v42, 0.0 }
 0x21f   :  { %1464 = vmatprep.mubr.f32.mxu1 %v1258_v43 }
 0x220   :  { %1465 = vmatmul.mubr.f32.vlgmr.msra.gmra.mxu1 %v1257_v41 }
 0x221   :  { %1781 = vmatprep.mubr.msk.f32.mxu1 %vm1962_vm0, %v1961_v17  ;;  %1774 = vmatpush3.msra.mxu1 %v1564_v49 }
 0x222   :  { %1775 = vmatprep.subr.mxu1 %v1961_v17 }
 0x223   :  { %1776 = vmatpush3.msra.mxu1 %v1563_v59 }
 0x224   :  { %1777 = vmatprep.subr.mxu1 %v1961_v17 }
 0x225   :  { %1778 = vmatpush3.msra.mxu1 %v1562_v26 }
 0x226   :  { %1779 = vmatprep.subr.mxu1 %v1961_v17 }
 0x227   :  { %1780 = vmatpush3.msra.mxu1 %v1561_v52 }
 0x25c   :  { %v1702_v50 = vpop.f32.mrf.mxu0 }
 0x25e   :  { %v1703_v51 = vpop.f32.mrf.mxu0 }
 0x25f   :  { %v1704_v53 = vadd.f32 %v1703_v51, %v1702_v50 }
 0x261   :  { %v1397_v57 = vadd.f32 %v1704_v53, %v1665_v54 }
 0x2e0   :  { %v1737_v55 = vpop.f32.mrf.mxu1 }
 0x2e2   :  { %v1738_v56 = vpop.f32.mrf.mxu1 }
 0x2e3   :  { %v1739_v8 = vadd.f32 %v1738_v56, %v1737_v55 }
 0x2e5   :  { %v1467_v58 = vadd.f32 %v1739_v8, %v1397_v57 }
 0x2e7   :  { %v1470_v62 = vmax.f32 %v1467_v58, 0.0 }
 0x2e9   :  { %1771 = vmatmul.mubr.msk.f32.vlgmr.msra.gmra.mxu0 %vm1486_vm1, %v1470_v62 }
 0x3a9   :  { %v1556_v21 = vpop.f32.mrf.mxu0 }
 0x3aa   :  { %v1557_v11 = vadd.f32 %v1666_v16, %v1556_v21 }
 0x3ab   :  { %v1772_v60 = vpop.f32.mrf.mxu0 }
 0x3ac   :  { %v1560_v61 = vmax.f32 %v1557_v11, 0.0 }
 0x3ae   :  { %1782 = vmatmul.mubr.msk.f32.vlgmr.msra.gmra.mxu1 %vm1572_vm2, %v1560_v61 }
 0x46e   :  { %v1642_v63 = vpop.f32.mrf.mxu1 }
 0x46f   :  { %v1643_v0 = vadd.f32 %v1668_v3, %v1642_v63 }
 0x470   :  { %v1783_v1 = vpop.f32.mrf.mxu1 }
 0x471   :  { %1646 = vst [vmem:[#allocation13] sm:$0x3] %v1643_v0 }
 0x472   :  { %1931 = shalt.err (!%p1928_p6)
}
 0x473   :  { %1656 = dma.vmem_to_hbm [thread:$0]  %s1654_s24, 32, %s2333_s9, [#allocation4]  }
 0x474   :  { %1948 = dma.done.wait [#allocation4], 32  }
 0x475   :  { %1949 = vsyncadd [#allocation4], 4294967264 }
 0x476   :  { %1660 = vsyncpa [#allocation3], 1 }
 0x477   :  { %1661 = vsyncpa [#allocation6], 1 }
 0x478   :  { %1662 = vsyncpa [#allocation9], 1 }
 0x479   :  { %1663 = vsyncpa [#allocation12], 1 }
 0x47a   :  { %1664 = vsyncpa [#allocation4], 1 }

</bundles_post_ra>
